<compile_context>
chip_gen: v6e
topology: v6e:2x2x1
jax: 0.10.0
libtpu: 0.0.40
codegen_flags: <defaults>
</compile_context>

<pallas_src>
import functools
import math

import jax
import jax.numpy as jnp
from jax.experimental import pallas as pl
from jax.experimental.pallas import tpu as pltpu


# ---------------------------------------------------------------------------
# Tile helper: largest tile <= target that is `align`-aligned and divides `dim`;
# falls back to the full dim (always a legal block shape).
# ---------------------------------------------------------------------------
def _pick_tile(dim, target, align):
    if dim <= target:
        return dim
    t = (min(target, dim) // align) * align
    while t >= align:
        if dim % t == 0:
            return t
        t -= align
    return dim


# ---------------------------------------------------------------------------
# Kernels 1/3 and 3/3: tiled dense linear   out = x @ w + b
#   bf16 operands on the MXU, f32 accumulator in VMEM, K axis is the reduction.
# ---------------------------------------------------------------------------
def _linear_kernel(x_ref, w_ref, b_ref, o_ref, acc_ref):
    k = pl.program_id(2)

    @pl.when(k == 0)
    def _():
        acc_ref[...] = jnp.zeros_like(acc_ref)

    acc_ref[...] += jnp.dot(x_ref[...], w_ref[...],
                            preferred_element_type=jnp.float32)

    @pl.when(k == pl.num_programs(2) - 1)
    def _():
        o_ref[...] = (acc_ref[...] + b_ref[...]).astype(o_ref.dtype)


def linear(x2d, w, b, *, out_dtype=None, tm=512, tn=512, tk=256):
    M, K = x2d.shape
    K2, N = w.shape
    assert K == K2
    out_dtype = out_dtype or x2d.dtype

    # bf16 operands: MXU-native on v5e/v6e/v7x and halves HBM bytes for the
    # memory-bound QKV / proj linears.  Bias and accumulator stay f32.
    xb = x2d.astype(jnp.bfloat16)
    wb = w.astype(jnp.bfloat16)
    bb = b.reshape(1, N).astype(jnp.float32)

    tm = _pick_tile(M, tm, 8)
    tn = _pick_tile(N, tn, 128)
    tk = _pick_tile(K, tk, 128)
    grid = (M // tm, N // tn, K // tk)

    return pl.pallas_call(
        _linear_kernel,
        out_shape=jax.ShapeDtypeStruct((M, N), out_dtype),
        grid_spec=pltpu.PrefetchScalarGridSpec(
            num_scalar_prefetch=0,
            grid=grid,
            in_specs=[
                pl.BlockSpec((tm, tk), lambda i, j, k: (i, k)),
                pl.BlockSpec((tk, tn), lambda i, j, k: (k, j)),
                pl.BlockSpec((1, tn), lambda i, j, k: (0, j)),
            ],
            out_specs=pl.BlockSpec((tm, tn), lambda i, j, k: (i, j)),
            scratch_shapes=[pltpu.VMEM((tm, tn), jnp.float32)],
        ),
        compiler_params=pltpu.CompilerParams(
            dimension_semantics=("parallel", "parallel", "arbitrary"),
            vmem_limit_bytes=32 * 1024 * 1024,
        ),
        cost_estimate=pl.CostEstimate(
            flops=2 * M * N * K,
            transcendentals=0,
            bytes_accessed=2 * (M * K + K * N) + 4 * N
            + M * N * jnp.dtype(out_dtype).itemsize,
        ),
    )(xb, wb, bb)


# ---------------------------------------------------------------------------
# Kernel 2/3: causal flash-style attention.
#   grid = (B, T // tq)
#   q_ref: (1, tq, C)   Q columns of the fused QKV for this q tile
#   k_ref: (1, T,  C)   K columns (resident per batch)
#   v_ref: (1, T,  C)   V columns (resident per batch)
#   o_ref: (1, tq, C)
# Heads are processed in a static loop; kv tiles strictly above the causal
# diagonal are skipped via a dynamic-trip-count fori_loop (online softmax).
# ---------------------------------------------------------------------------
def _attention_kernel(q_ref, k_ref, v_ref, o_ref, *, n_head, d_head):
    tq = q_ref.shape[1]
    qi = pl.program_id(1)
    scale = 1.0 / math.sqrt(d_head)
    neg_big = jnp.float32(-1e30)   # finite sentinel, safer than -inf

    # Per-tile causal mask indices, hoisted out of the kv / head loops.
    row = qi * tq + jax.lax.broadcasted_iota(jnp.int32, (tq, tq), 0)
    col_local = jax.lax.broadcasted_iota(jnp.int32, (tq, tq), 1)

    # Causal block skip: only kv tiles 0..qi intersect the unmasked region.
    num_kv = qi + 1

    for h in range(n_head):
        lo = h * d_head
        # Fold 1/sqrt(D) into Q once (O(tq*D) mults instead of O(tq*T)).
        q = (q_ref[0, :, lo:lo + d_head].astype(jnp.float32) * scale
             ).astype(jnp.bfloat16)                                    # (tq, D)

        def kv_body(kv, carry, q=q, lo=lo):
            m_prev, l_prev, acc_prev = carry
            start = pl.multiple_of(kv * tq, tq)
            k_blk = k_ref[0, pl.ds(start, tq), lo:lo + d_head].astype(jnp.bfloat16)
            v_blk = v_ref[0, pl.ds(start, tq), lo:lo + d_head].astype(jnp.bfloat16)

            # Contract on D directly (no transposed copy of K); f32 accumulate.
            s = jax.lax.dot_general(
                q, k_blk, (((1,), (1,)), ((), ())),
                preferred_element_type=jnp.float32)                    # (tq, tq)
            s = jnp.where(col_local + start <= row, s, neg_big)

            m_new = jnp.maximum(m_prev, jnp.max(s, axis=-1, keepdims=True))
            alpha = jnp.exp(m_prev - m_new)
            p = jnp.exp(s - m_new)                                     # in [0, 1]
            l_new = alpha * l_prev + jnp.sum(p, axis=-1, keepdims=True)
            acc_new = alpha * acc_prev + jnp.dot(
                p.astype(jnp.bfloat16), v_blk,
                preferred_element_type=jnp.float32)                    # (tq, D)
            return m_new, l_new, acc_new

        m0 = jnp.full((tq, 1), neg_big, jnp.float32)
        l0 = jnp.zeros((tq, 1), jnp.float32)
        a0 = jnp.zeros((tq, d_head), jnp.float32)
        _, l_f, acc_f = jax.lax.fori_loop(0, num_kv, kv_body, (m0, l0, a0))

        # Exact divide: the denominator is only (tq, 1), cost is negligible.
        o_ref[0, :, lo:lo + d_head] = (acc_f / l_f).astype(o_ref.dtype)


def attention(qkv, n_head, c, *, block_q=128):
    B, T, c3 = qkv.shape
    assert c3 == 3 * c
    d_head = c // n_head
    tq = _pick_tile(T, block_q, 8)
    nq = T // tq
    itemsize = jnp.dtype(qkv.dtype).itemsize

    kernel = functools.partial(_attention_kernel, n_head=n_head, d_head=d_head)
    return pl.pallas_call(
        kernel,
        out_shape=jax.ShapeDtypeStruct((B, T, c), qkv.dtype),
        grid=(B, nq),
        in_specs=[
            # Same fused qkv array passed three times; column blocks 0 / 1 / 2.
            pl.BlockSpec((1, tq, c), lambda b, q: (b, q, 0)),   # Q (per q tile)
            pl.BlockSpec((1, T, c), lambda b, q: (b, 0, 1)),    # K (resident per batch)
            pl.BlockSpec((1, T, c), lambda b, q: (b, 0, 2)),    # V (resident per batch)
        ],
        out_specs=pl.BlockSpec((1, tq, c), lambda b, q: (b, q, 0)),
        compiler_params=pltpu.CompilerParams(
            dimension_semantics=("parallel", "parallel"),
            vmem_limit_bytes=32 * 1024 * 1024,
        ),
        cost_estimate=pl.CostEstimate(
            flops=2 * B * T * T * c,                     # causal-halved QK^T + PV
            transcendentals=B * n_head * T * T // 2,     # exp (causal half)
            bytes_accessed=(3 * B * T * c + B * T * c3 + B * T * c) * itemsize,
        ),
    )(qkv, qkv, qkv)


# ---------------------------------------------------------------------------
# Full module forward (matches MultiheadAttention.forward)
# ---------------------------------------------------------------------------
def multihead_attention(x, params, n_head):
    B, T, C = x.shape
    # fused QKV projection (bf16 output feeds the attention matmuls directly)
    qkv = linear(x.reshape(B * T, C), params["attn_w"], params["attn_b"],
                 out_dtype=jnp.bfloat16)
    # causal attention on the fused QKV (no split / transpose in the wrapper)
    y = attention(qkv.reshape(B, T, 3 * C), n_head, C)          # (B, T, C) bf16
    # output projection back to the input dtype
    y = linear(y.reshape(B * T, C), params["proj_w"], params["proj_b"],
               out_dtype=x.dtype)
    return y.reshape(B, T, C)


# ---------------------------------------------------------------------------
# Pure-JAX reference (mirrors the PyTorch forward exactly, in f32)
# ---------------------------------------------------------------------------
def reference(x, params, n_head):
    B, T, C = x.shape
    D = C // n_head
    qkv = x @ params["attn_w"] + params["attn_b"]
    q, k, v = jnp.split(qkv, 3, axis=2)
    q = q.reshape(B, T, n_head, D).transpose(0, 2, 1, 3)
    k = k.reshape(B, T, n_head, D).transpose(0, 2, 1, 3)
    v = v.reshape(B, T, n_head, D).transpose(0, 2, 1, 3)
    att = (q @ jnp.swapaxes(k, -2, -1)) * (1.0 / math.sqrt(D))
    mask = jnp.tril(jnp.ones((T, T)))[None, None]
    att = jnp.where(mask == 0, -jnp.inf, att)
    att = jax.nn.softmax(att, axis=-1)
    y = att @ v
    y = y.transpose(0, 2, 1, 3).reshape(B, T, C)
    return y @ params["proj_w"] + params["proj_b"]


if __name__ == "__main__":
    # Small config consistent with the module (C % n_head == 0, D = 64 like GPT).
    # T = 256 with block_q = 128 exercises multiple q tiles and the causal
    # block-skip loop (1 kv block for the first q tile, 2 for the second).
    B, T, C, n_head = 2, 256, 256, 4

    key = jax.random.PRNGKey(0)
    kx, kw1, kb1, kw2, kb2 = jax.random.split(key, 5)

    # deterministic "nn.Linear"-style init (uniform in +-1/sqrt(fan_in))
    bound = 1.0 / math.sqrt(C)
    params = {
        "attn_w": jax.random.uniform(kw1, (C, 3 * C), jnp.float32, -bound, bound),
        "attn_b": jax.random.uniform(kb1, (3 * C,), jnp.float32, -bound, bound),
        "proj_w": jax.random.uniform(kw2, (C, C), jnp.float32, -bound, bound),
        "proj_b": jax.random.uniform(kb2, (C,), jnp.float32, -bound, bound),
    }
    x = jax.random.normal(kx, (B, T, C), jnp.float32)

    out = jax.block_until_ready(multihead_attention(x, params, n_head))
    ref = reference(x, params, n_head)

    assert out.shape == (B, T, C)
    # tolerance accounts for bf16 matmul operands (f32 accumulation everywhere)
    assert jnp.allclose(out, ref, atol=3e-2, rtol=3e-2), "mismatch vs reference"
    print("KERNEL_OK")
</pallas_src>

<mosaic_0001>
module attributes {stable_mosaic.version = 11 : i64} {
  func.func @_linear_kernel(%arg0: i32, %arg1: i32, %arg2: i32, %arg3: memref<512x256xbf16, #tpu.memory_space<vmem>>, %arg4: memref<256x384xbf16, #tpu.memory_space<vmem>>, %arg5: memref<1x384xf32, #tpu.memory_space<vmem>>, %arg6: memref<512x384xbf16, #tpu.memory_space<vmem>>, %arg7: memref<512x384xf32, #tpu.memory_space<vmem>>) attributes {dimension_semantics = [#tpu.dimension_semantics<parallel>, #tpu.dimension_semantics<parallel>, #tpu.dimension_semantics<arbitrary>], iteration_bounds = array<i64: 1, 2, 1>, scalar_prefetch = 0 : i64, scratch_operands = 1 : i64, tpu.core_type = #tpu.core_type<tc>, window_params = [{transform_indices = @transform_0, window_bounds = array<i64: 512, 256>}, {transform_indices = @transform_1, window_bounds = array<i64: 256, 384>}, {transform_indices = @transform_2, window_bounds = array<i64: 1, 384>}, {transform_indices = @transform_3, window_bounds = array<i64: 512, 384>}]} {
    %c0_i32 = arith.constant 0 : i32
    %0 = arith.cmpi eq, %arg2, %c0_i32 : i32
    %1 = arith.extui %0 : i1 to i32
    %c0_i32_0 = arith.constant 0 : i32
    %2 = arith.cmpi ne, %1, %c0_i32_0 : i32
    scf.if %2 {
      %cst_10 = arith.constant 0.000000e+00 : f32
      %12 = vector.broadcast %cst_10 : f32 to vector<512x384xf32>
      %c0_11 = arith.constant 0 : index
      %c0_12 = arith.constant 0 : index
      %13 = vector.load %arg7[%c0_11, %c0_12] : memref<512x384xf32, #tpu.memory_space<vmem>>, vector<512x384xf32>
      tpu.vector_store %arg7[%c0_11, %c0_12], %12 {strides = array<i32>} : memref<512x384xf32, #tpu.memory_space<vmem>>, vector<512x384xf32>,
    } else {
    }
    %c0 = arith.constant 0 : index
    %c0_1 = arith.constant 0 : index
    %3 = vector.load %arg7[%c0, %c0_1] : memref<512x384xf32, #tpu.memory_space<vmem>>, vector<512x384xf32>
    %c0_2 = arith.constant 0 : index
    %c0_3 = arith.constant 0 : index
    %4 = vector.load %arg3[%c0_2, %c0_3] : memref<512x256xbf16, #tpu.memory_space<vmem>>, vector<512x256xbf16>
    %c0_4 = arith.constant 0 : index
    %c0_5 = arith.constant 0 : index
    %5 = vector.load %arg4[%c0_4, %c0_5] : memref<256x384xbf16, #tpu.memory_space<vmem>>, vector<256x384xbf16>
    %cst = arith.constant dense<0.000000e+00> : vector<512x384xf32>
    %6 = tpu.matmul %4, %5, %cst {dimension_numbers = #tpu.dot_dimension_numbers<[1], [0], [0], [1], [0, 0, 1, 1], [], []>} : vector<512x256xbf16>, vector<256x384xbf16>, vector<512x384xf32> -> vector<512x384xf32>
    %7 = arith.addf %3, %6 : vector<512x384xf32>
    %c0_6 = arith.constant 0 : index
    %c0_7 = arith.constant 0 : index
    %8 = vector.load %arg7[%c0_6, %c0_7] : memref<512x384xf32, #tpu.memory_space<vmem>>, vector<512x384xf32>
    tpu.vector_store %arg7[%c0_6, %c0_7], %7 {strides = array<i32>} : memref<512x384xf32, #tpu.memory_space<vmem>>, vector<512x384xf32>,
    %c0_i32_8 = arith.constant 0 : i32
    %9 = arith.cmpi eq, %arg2, %c0_i32_8 : i32
    %10 = arith.extui %9 : i1 to i32
    %c0_i32_9 = arith.constant 0 : i32
    %11 = arith.cmpi ne, %10, %c0_i32_9 : i32
    scf.if %11 {
      %c0_10 = arith.constant 0 : index
      %c0_11 = arith.constant 0 : index
      %12 = vector.load %arg7[%c0_10, %c0_11] : memref<512x384xf32, #tpu.memory_space<vmem>>, vector<512x384xf32>
      %c0_12 = arith.constant 0 : index
      %c0_13 = arith.constant 0 : index
      %13 = vector.load %arg5[%c0_12, %c0_13] : memref<1x384xf32, #tpu.memory_space<vmem>>, vector<1x384xf32>
      %14 = vector.broadcast %13 : vector<1x384xf32> to vector<512x384xf32>
      %15 = arith.addf %12, %14 : vector<512x384xf32>
      %16 = arith.truncf %15 : vector<512x384xf32> to vector<512x384xbf16>
      %c0_14 = arith.constant 0 : index
      %c0_15 = arith.constant 0 : index
      %17 = vector.load %arg6[%c0_14, %c0_15] : memref<512x384xbf16, #tpu.memory_space<vmem>>, vector<512x384xbf16>
      tpu.vector_store %arg6[%c0_14, %c0_15], %16 {strides = array<i32>} : memref<512x384xbf16, #tpu.memory_space<vmem>>, vector<512x384xbf16>,
    } else {
    }
    return
  }
  func.func @transform_0(%arg0: i32, %arg1: i32, %arg2: i32) -> (i32, i32) {
    %c0_i32 = arith.constant 0 : i32
    return %arg0, %arg2 : i32, i32
  }
  func.func @transform_1(%arg0: i32, %arg1: i32, %arg2: i32) -> (i32, i32) {
    %c0_i32 = arith.constant 0 : i32
    return %arg2, %arg1 : i32, i32
  }
  func.func @transform_2(%arg0: i32, %arg1: i32, %arg2: i32) -> (i32, i32) {
    %c0_i32 = arith.constant 0 : i32
    %c0_i32_0 = arith.constant 0 : i32
    return %c0_i32, %arg1 : i32, i32
  }
  func.func @transform_3(%arg0: i32, %arg1: i32, %arg2: i32) -> (i32, i32) {
    %c0_i32 = arith.constant 0 : i32
    return %arg0, %arg1 : i32, i32
  }
}

</mosaic_0001>

<bundles_post_ra>
// kernel: tpu_custom_call.1
= control target key start
LH: loop header
LB: loop body
LE: loop exit
PB: predicated region body
PF: predicated region fallthrough
CT: control target
= control target key end

     0   :  { %8 = vsyncpa [#allocation4], 0  ;;  %s5152_s0 = inlined_call_operand.hbm [shape: bf16[512,256], index: 0, kind: input, shape index: {}]   ;;  %s5153_s1 = inlined_call_operand.hbm [shape: bf16[256,768], index: 1, kind: input, shape index: {}]   ;;  %s5154_s2 = inlined_call_operand.hbm [shape: f32[1,768], index: 2, kind: input, shape index: {}]   ;;  %s5155_s3 = inlined_call_operand.hbm [shape: bf16[512,768], index: 3, kind: output, shape index: {}]  }
   0x1   :  { %9 = vsyncpa [#allocation7], 0 }
   0x2   :  { %11 = vsyncpa [#allocation7 + $0x1], 0 }
   0x3   :  { %12 = vsyncpa [#allocation5], 0 }
   0x4   :  { %14 = vsyncpa [#allocation5 + $0x1], 0  ;;  %s4556_s12 = smov 0   ;;  %s4558_s13 = smov 0  }
   0x5   :  { %s4560_s14 = smov 0   ;;  %s4562_s15 = smov 0  }
   0x6   :  { %s4564_s16 = smov 0   ;;  %s4566_s17 = smov 0  }
   0x7 LB: > { %s35_s18 = sadd.s32 1, %s4517_s16  ;;  %s76_s19 = sadd.s32 1, %s4509_s14  ;;  %s4521_s17 = sphi %s4566_s17, %s20_s17   ;;  %s4517_s16 = sphi %s4564_s16, %s5175_s16   ;;  %s4513_s15 = sphi %s4562_s15, %s5174_s15   ;;  %s4509_s14 = sphi %s4560_s14, %s5173_s14   ;;  %s4505_s13 = sphi %s4558_s13, %s5172_s13   ;;  %s4501_s12 = sphi %s4556_s12, %s5171_s12  }
   0x8   : > { %p37_p0 = scmp.ge.s32.totalorder %s35_s18, 2  ;;  %p83_p1 = scmp.ne.s32.totalorder %s4509_s14, %s4505_s13 }
   0x9   : > { %p84_p2 = scmp.eq.s32.totalorder %s4521_s17, 0  ;;  %p4134_p5 = scmp.lt.s32.totalorder %s4521_s17, 2 }
   0xa   : > { %s5177_s18 = smov (%p37_p0, %s35_s18), 0  ;;  %s186_s21 = sand.u32 1, %s4521_s17  }
   0xb   : > { %p85_p4 = por %p84_p2, %p83_p1  ;;  %s72_s20 = ssub.s32 %s4517_s16, %s5177_s18 }
   0xc   : > { %p74_p6 = scmp.eq.s32.totalorder %s72_s20, 0  ;;  %s188_s22 = sand.u32 1, %s4509_s14  }
   0xd   : > { %s3972_s23 = smul.u32 192, %s4517_s16  ;;  %p4611_p7 = pnand %p4134_p5, %p85_p4 }
   0xe   : > { %s4604_s24 = scalar_select %p74_p6, %s4509_s14, %s76_s19  }
   0xf   : > { %s4103_s25 = smul.u32 384, %s188_s22  ;;  %s199_s28 = scalar_lea.hbm %s5153_s1, %s3972_s23 }
  0x10   : > { %s4615_s5 = scalar_lea.sflag [#allocation7], %s186_s21  ;;  %p5157_p8 = pneg %p4611_p7 }
  0x11   : > { %s190_s30 = scalar_lea.vmem [#allocation6], %s4103_s25  ;;  %s4523_s7 = smov [#allocation6]  }
  0x12   : > { %s200_s4 = sshll.u32 %s190_s30, 4  ;;  %s4373_s8 = sshll.u32 %s4523_s7, 4  ;;  %s201_s4 = int_to_ptr.vmem [resolvable:$true] %s200_s4  ;;  %s4374_s8 = int_to_ptr.vmem [resolvable:$false] %s4373_s8 }
  0x13   : > { %s4368_s6 = scalar_lea.vmem %s201_s4, 6144  ;;  %s4375_s9 = scalar_lea.vmem %s4374_s8, 12288 }
  0x14   : > { %p4369_p9 = scmp.ne.s32.totalorder %s201_s4, %s4368_s6  ;;  %p4376_p12 = scmp.lt.s32.totalorder %s201_s4, %s4374_s8 }
  0x15   : > { %p4377_p13 = scmp.lt.s32.totalorder %s4375_s9, %s4368_s6 }
  0x16   : > { %p4371_p10 = pnand %p4369_p9, %p5157_p8 }
  0x17   : > { %p4378_p0 = por %p4377_p13, %p4376_p12 }
  0x18   : > { %p4372_p11 = pneg %p4371_p10 }
  0x1a   : > { %p4379_p2 = pnand %p4378_p0, %p4372_p11 }
  0x1c   : > { %4382 = shalt.err (!%p4379_p2)
}
  0x1d   : > { %s4524_s10 = smov 384   ;;  %s4525_s11 = smov 192  }
  0x1e   : > { %s4526_s19 = smov 12   ;;  %s4626_s20 = sadd.s32 4294967295, %s4521_s17  }
  0x1f   : > { %4125 = dma.hbm_to_vmem [thread:$0]  (!%p4611_p7), %s199_s28, 6144, %s201_s4, %s4615_s5, %s4524_s10, %s4525_s11, %s4526_s19  }
  0x20   : > { %s3721_s21 = sadd.s32 4294967294, %s4521_s17   ;;  %p89_p4 = scmp.ne.s32.totalorder %s4505_s13, %s4501_s12 }
  0x21   : > { %p5156_p5 = scmp.eq.s32.totalorder %s4626_s20, 0  ;;  %p141_p6 = scmp.eq.s32.totalorder %s4626_s20, 1 }
  0x22   : > { %p147_p9 = scmp.eq.s32.totalorder %s3721_s21, 1  ;;  %p3722_p11 = scmp.ge.s32.totalorder %s4521_s17, 1 }
  0x23   : > { %p4635_p10 = por %p5156_p5, %p89_p4  ;;  %p4643_p12 = por %p141_p6, %p83_p1 }
  0x24   : > { %p4647_p13 = por %p147_p9, %p89_p4  ;;  %p154_p0 = scmp.lt.s32.totalorder %s4521_s17, 3 }
  0x25   : > { %s5161_s25 = scalar_select %p4643_p12, 1, 0 }
  0x26   : > { %s5162_s26 = scalar_select %p4647_p13, 1, 0 }
  0x27   : > { %p4652_p2 = pnand %p3722_p11, %p154_p0  ;;  %s4527_s28 = smov [#allocation3]  }
  0x28   : > { %s172_s30 = sshll.u32 %s4527_s28, 4  ;;  %s4104_s4 = smul.u32 3, %s188_s22  ;;  %s173_s30 = int_to_ptr.vmem [resolvable:$true] %s172_s30 }
  0x29   : > { %p4118_p3 = pneg %p4652_p2  ;;  %s3973_s6 = smul.u32 48, %s4517_s16 }
  0x2a   : > { %s214_s11 = scalar_lea.vmem [#allocation8], %s4104_s4  ;;  %s4394_s21 = scalar_lea.vmem %s173_s30, 8192 }
  0x2b   : > { %p4663_p1 = pnand %p4118_p3, %p5156_p5  ;;  %s4670_s10 = scalar_lea.hbm %s5154_s2, %s3973_s6 }
  0x2c   : > { %s222_s19 = sshll.u32 %s214_s11, 4  ;;  %p4395_p6 = scmp.ne.s32.totalorder %s173_s30, %s4394_s21  ;;  %s223_s19 = int_to_ptr.vmem [resolvable:$true] %s222_s19 }
  0x2d   : > { %p4385_p4 = pneg %p4663_p1  ;;  %p4402_p0 = scmp.lt.s32.totalorder %s173_s30, %s173_s30 }
  0x2e   : > { %p4403_p3 = scmp.lt.s32.totalorder %s4394_s21, %s4394_s21 }
  0x2f   : > { %p4397_p9 = pnand %p4395_p6, %p4385_p4 }
  0x30   : > { %p4404_p5 = por %p4403_p3, %p4402_p0 }
  0x31   : > { %p4398_p11 = pneg %p4397_p9 }
  0x33   : > { %p4405_p8 = pnand %p4404_p5, %p4398_p11 }
  0x35   : > { %4408 = shalt.err (!%p4405_p8)
}
  0x36   : > { %s4528_s22 = smov 128   ;;  %s4529_s28 = smov 8  }
  0x37   : > { %4121 = dma.hbm_to_vmem [thread:$0]  (!%p4663_p1), %s5152_s0, 8192, %s173_s30, [#allocation4], %s4528_s22, %s4528_s22, %s4529_s28  }
  0x38   : > { %s4422_s8 = scalar_lea.vmem %s223_s19, 48  ;;  %p5165_p12 = pneg %p4611_p7 }
  0x39   : > { %p4423_p13 = scmp.ne.s32.totalorder %s223_s19, %s4422_s8  ;;  %s4530_s9 = smov [#allocation8]  }
  0x3a   : > { %s4427_s11 = sshll.u32 %s4530_s9, 4  ;;  %s4428_s11 = int_to_ptr.vmem [resolvable:$false] %s4427_s11 }
  0x3b   : > { %p4425_p4 = pnand %p4423_p13, %p5165_p12  ;;  %s4429_s21 = scalar_lea.vmem %s4428_s11, 96 }
  0x3c   : > { %p4430_p8 = scmp.lt.s32.totalorder %s223_s19, %s4428_s11  ;;  %p4431_p5 = scmp.lt.s32.totalorder %s4429_s21, %s4422_s8 }
  0x3d   : > { %p4426_p6 = pneg %p4425_p4 }
  0x3e   : > { %p4432_p9 = por %p4431_p5, %p4430_p8 }
  0x40   : > { %p4433_p11 = pnand %p4432_p9, %p4426_p6 }
  0x42   : > { %4436 = shalt.err (!%p4433_p11)
}
  0x43   : > { %4128 = dma.hbm_to_vmem [thread:$0]  (!%p4611_p7), %s4670_s10, 48, %s223_s19, %s4615_s5  }
  0x44   : > { %231 = sbr.rel (%p4652_p2) target bundleno = 610 (0x262), region = 32  ;;  %p5166_p12 = scmp.eq.s32.totalorder (!%p4652_p2), %s4626_s20, 0 }
  0x49   : > { %4488 = dma.done.wait (%p5166_p12), [#allocation4], 8192   ;;  %p5167_p13 = pmov %p5166_p12 }
  0x4a   : > { %s237_s30 = sand.u32 1, %s4626_s20   ;;  %s4694_s7 = sand.u32 1, %s4505_s13  }
  0x4b   : > { %4490 = vsyncadd (%p5167_p13), [#allocation4], 4294959104  ;;  %s4105_s29 = smul.u32 384, %s4694_s7  ;;  %s238_s22 = scalar_lea.sflag [#allocation7], %s237_s30 }
  0x4d   : > { %s4697_s28 = scalar_lea.vmem [#allocation6], %s4105_s29 }
  0x4e   : > { %4492 = dma.done.wait (%p4635_p10), %s238_s22, 6192  }
  0x4f   : > { %4494 = vsyncadd (%p4635_p10), %s238_s22, 4294961104  ;;  %v4531_v0 = vmov 0   ;;  %v4195_v1 = vld [vmem:[%s4697_s28 + $0xac] ss:$12 sps:$4 sm:$0xff]   ;;  %v4197_v2 = vld [vmem:[%s4697_s28 + $0xb0] ss:$12 sps:$4 sm:$0xff]  }
  0x50   : > { %1731 = vmatprep.subr.bf16.mxu1 %v4531_v0  ;;  %1378 = vmatprep.subr.bf16.mxu0 %v4195_v1  ;;  %v4198_v3 = vld [vmem:[%s4697_s28 + $0xa8] ss:$12 sps:$4 sm:$0xff]   ;;  %v4201_v5 = vld [vmem:[%s4697_s28 + $0x98] ss:$12 sps:$4 sm:$0xff]   ;;  %v4202_v6 = vld [vmem:[%s4697_s28 + $0x90] ss:$12 sps:$4 sm:$0xff]  }
  0x51   : > { %1732 = vmatpush1.bf16.msra.mxu1 %v4197_v2  ;;  %v4199_v4 = vld [vmem:[%s4697_s28 + $0x94] ss:$12 sps:$4 sm:$0xff]   ;;  %1379 = vmatpush1.bf16.msra.mxu0 %v4198_v3  ;;  %v4203_v7 = vld [vmem:[%s4697_s28 + $0x7c] ss:$12 sps:$4 sm:$0xff]   ;;  %v4206_v9 = vld [vmem:[%s4697_s28 + $0x78] ss:$12 sps:$4 sm:$0xff]  }
  0x52   : > { %1733 = vmatprep.subr.bf16.mxu1 %v4531_v0  ;;  %1380 = vmatprep.subr.bf16.mxu0 %v4199_v4  ;;  %v4205_v8 = vld [vmem:[%s4697_s28 + $0x80] ss:$12 sps:$4 sm:$0xff]   ;;  %v4207_v10 = vld [vmem:[%s4697_s28 + $0x64] ss:$12 sps:$4 sm:$0xff]   ;;  %v4209_v11 = vld [vmem:[%s4697_s28 + $0x68] ss:$12 sps:$4 sm:$0xff]  }
  0x53   : > { %v4210_v12 = vld [vmem:[%s4697_s28 + $0x60] ss:$12 sps:$4 sm:$0xff]   ;;  %v4213_v14 = vld [vmem:[%s4697_s28 + $0x50] ss:$12 sps:$4 sm:$0xff]   ;;  %v4214_v15 = vld [vmem:[%s4697_s28 + $0x48] ss:$12 sps:$4 sm:$0xff]  }
  0x54   : > { %v4211_v13 = vld [vmem:[%s4697_s28 + $0x4c] ss:$12 sps:$4 sm:$0xff]   ;;  %v4215_v16 = vld [vmem:[%s4697_s28 + $0x34] ss:$12 sps:$4 sm:$0xff]   ;;  %v4218_v18 = vld [vmem:[%s4697_s28 + $0x30] ss:$12 sps:$4 sm:$0xff]  }
  0x55   : > { %1734 = vmatpush1.bf16.msra.mxu1 %v4201_v5  ;;  %1381 = vmatpush1.bf16.msra.mxu0 %v4202_v6  ;;  %v4217_v17 = vld [vmem:[%s4697_s28 + $0x38] ss:$12 sps:$4 sm:$0xff]   ;;  %v4219_v19 = vld [vmem:[%s4697_s28 + $0x1c] ss:$12 sps:$4 sm:$0xff]   ;;  %v4221_v20 = vld [vmem:[%s4697_s28 + $0x20] ss:$12 sps:$4 sm:$0xff]  }
  0x56   : > { %1735 = vmatprep.subr.bf16.mxu1 %v4531_v0  ;;  %1382 = vmatprep.subr.bf16.mxu0 %v4203_v7  ;;  %v4222_v21 = vld [vmem:[%s4697_s28 + $0x18] ss:$12 sps:$4 sm:$0xff]   ;;  %v4225_v23 = vld [vmem:[%s4697_s28 + $0x8] ss:$12 sps:$4 sm:$0xff]   ;;  %v4226_v24 = vld [vmem:[%s4697_s28] ss:$12 sps:$4 sm:$0xff]  }
  0x57   : > { %v4223_v22 = vld [vmem:[%s4697_s28 + $0x4] ss:$12 sps:$4 sm:$0xff]   ;;  %v4227_v25 = vld [vmem:[%s4697_s28 + $0x16c] ss:$12 sps:$4 sm:$0xff]   ;;  %v4230_v27 = vld [vmem:[%s4697_s28 + $0x168] ss:$12 sps:$4 sm:$0xff]  }
  0x58   : > { %v4229_v26 = vld [vmem:[%s4697_s28 + $0x170] ss:$12 sps:$4 sm:$0xff]   ;;  %v4231_v28 = vld [vmem:[%s4697_s28 + $0x154] ss:$12 sps:$4 sm:$0xff]   ;;  %v4233_v29 = vld [vmem:[%s4697_s28 + $0x158] ss:$12 sps:$4 sm:$0xff]  }
  0x59   : > { %1736 = vmatpush1.bf16.msra.mxu1 %v4205_v8  ;;  %1383 = vmatpush1.bf16.msra.mxu0 %v4206_v9  ;;  %v4234_v30 = vld [vmem:[%s4697_s28 + $0x150] ss:$12 sps:$4 sm:$0xff]   ;;  %v4261_v32 = vld [vmem:[#allocation3 + $0x4] ss:$8 sps:$4 sm:$0xff]   ;;  %v4241_v36 = vld [vmem:[%s4697_s28 + $0x128] ss:$12 sps:$4 sm:$0xff]  }
  0x5a   : > { %1737 = vmatprep.subr.bf16.mxu1 %v4531_v0  ;;  %1384 = vmatprep.subr.bf16.mxu0 %v4207_v10  ;;  %v4235_v31 = vld [vmem:[%s4697_s28 + $0x13c] ss:$12 sps:$4 sm:$0xff]   ;;  %v4237_v33 = vld [vmem:[%s4697_s28 + $0x140] ss:$12 sps:$4 sm:$0xff]   ;;  %v4238_v34 = vld [vmem:[%s4697_s28 + $0x138] ss:$12 sps:$4 sm:$0xff]  }
  0x5b   : > { %v4239_v35 = vld [vmem:[%s4697_s28 + $0x124] ss:$12 sps:$4 sm:$0xff]   ;;  %1763 = vmatprep.mubr.bf16.mxu1 %v4261_v32  ;;  %1410 = vmatprep.mubr.bf16.mxu0 %v4261_v32  ;;  %v4242_v37 = vld [vmem:[%s4697_s28 + $0x120] ss:$12 sps:$4 sm:$0xff]   ;;  %v4246_v40 = vld [vmem:[%s4697_s28 + $0x108] ss:$12 sps:$4 sm:$0xff]   ;;  %v2601_v32 = vlaneseq }
  0x5c   : > { %v4243_v38 = vld [vmem:[%s4697_s28 + $0x10c] ss:$12 sps:$4 sm:$0xff]   ;;  %v4245_v39 = vld [vmem:[%s4697_s28 + $0x110] ss:$12 sps:$4 sm:$0xff]   ;;  %v4247_v41 = vld [vmem:[%s4697_s28 + $0xf4] ss:$12 sps:$4 sm:$0xff]  }
  0x5d   : > { %1738 = vmatpush1.bf16.msra.mxu1 %v4209_v11  ;;  %1385 = vmatpush1.bf16.msra.mxu0 %v4210_v12  ;;  %v4249_v42 = vld [vmem:[%s4697_s28 + $0xf8] ss:$12 sps:$4 sm:$0xff]   ;;  %v4250_v43 = vld [vmem:[%s4697_s28 + $0xf0] ss:$12 sps:$4 sm:$0xff]   ;;  %v4253_v45 = vld [vmem:[%s4697_s28 + $0xe0] ss:$12 sps:$4 sm:$0xff]  }
  0x5e   : > { %1739 = vmatprep.subr.bf16.mxu1 %v4531_v0  ;;  %1386 = vmatprep.subr.bf16.mxu0 %v4211_v13  ;;  %v4251_v44 = vld [vmem:[%s4697_s28 + $0xdc] ss:$12 sps:$4 sm:$0xff]   ;;  %v4254_v46 = vld [vmem:[%s4697_s28 + $0xd8] ss:$12 sps:$4 sm:$0xff]   ;;  %v4258_v49 = vld [vmem:[%s4697_s28 + $0xc0] ss:$12 sps:$4 sm:$0xff]  }
  0x5f   : > { %v4255_v47 = vld [vmem:[%s4697_s28 + $0xc4] ss:$12 sps:$4 sm:$0xff]   ;;  %v4257_v48 = vld [vmem:[%s4697_s28 + $0xc8] ss:$12 sps:$4 sm:$0xff]   ;;  %s4106_s5 = smul.u32 3, %s4694_s7  ;;  %s3577_s8 = scalar_lea.sflag [#allocation5], %s4694_s7 }
  0x60   : > { %v4259_v50 = vld [vmem:[#allocation3] ss:$8 sps:$4 sm:$0xff]   ;;  %v4262_v51 = vld [vmem:[#allocation3 + $0x14] ss:$8 sps:$4 sm:$0xff]   ;;  %v4264_v52 = vld [vmem:[#allocation3 + $0x10] ss:$8 sps:$4 sm:$0xff]  }
  0x61   : > { %1740 = vmatpush1.bf16.msra.mxu1 %v4213_v14  ;;  %1387 = vmatpush1.bf16.msra.mxu0 %v4214_v15  ;;  %v4265_v53 = vld [vmem:[#allocation3 + $0x24] ss:$8 sps:$4 sm:$0xff]   ;;  %v4267_v54 = vld [vmem:[#allocation3 + $0x20] ss:$8 sps:$4 sm:$0xff]   ;;  %v4268_v55 = vld [vmem:[#allocation3 + $0x34] ss:$8 sps:$4 sm:$0xff]  }
  0x62   : > { %1741 = vmatprep.subr.bf16.mxu1 %v4531_v0  ;;  %1388 = vmatprep.subr.bf16.mxu0 %v4215_v16  ;;  %v4270_v56 = vld [vmem:[#allocation3 + $0x30] ss:$8 sps:$4 sm:$0xff]   ;;  %v4271_v57 = vld [vmem:[#allocation3 + $0x44] ss:$8 sps:$4 sm:$0xff]   ;;  %v4273_v58 = vld [vmem:[#allocation3 + $0x40] ss:$8 sps:$4 sm:$0xff]  }
  0x63   : > { %v4274_v59 = vld [vmem:[#allocation3 + $0x54] ss:$8 sps:$4 sm:$0xff]   ;;  %v4276_v60 = vld [vmem:[#allocation3 + $0x50] ss:$8 sps:$4 sm:$0xff]   ;;  %v4277_v61 = vld [vmem:[#allocation3 + $0x64] ss:$8 sps:$4 sm:$0xff]  }
  0x64   : > { %v4279_v62 = vld [vmem:[#allocation3 + $0x60] ss:$8 sps:$4 sm:$0xff]   ;;  %v4280_v63 = vld [vmem:[#allocation3 + $0x74] ss:$8 sps:$4 sm:$0xff]   ;;  %v4283_v1 = vld [vmem:[#allocation3 + $0x84] ss:$8 sps:$4 sm:$0xff]  }
  0x65   : > { %1742 = vmatpush1.bf16.msra.mxu1 %v4217_v17  ;;  %1389 = vmatpush1.bf16.msra.mxu0 %v4218_v18  ;;  %v4285_v2 = vld [vmem:[#allocation3 + $0x80] ss:$8 sps:$4 sm:$0xff]   ;;  %v4286_v3 = vld [vmem:[#allocation3 + $0x94] ss:$8 sps:$4 sm:$0xff]   ;;  %v4288_v4 = vld [vmem:[#allocation3 + $0x90] ss:$8 sps:$4 sm:$0xff]  }
  0x66   : > { %1743 = vmatprep.subr.bf16.mxu1 %v4531_v0  ;;  %1390 = vmatprep.subr.bf16.mxu0 %v4219_v19  ;;  %v4289_v5 = vld [vmem:[#allocation3 + $0xa4] ss:$8 sps:$4 sm:$0xff]   ;;  %v4291_v6 = vld [vmem:[#allocation3 + $0xa0] ss:$8 sps:$4 sm:$0xff]   ;;  %v4292_v7 = vld [vmem:[#allocation3 + $0xb4] ss:$8 sps:$4 sm:$0xff]  }
  0x67   : > { %v4294_v8 = vld [vmem:[#allocation3 + $0xb0] ss:$8 sps:$4 sm:$0xff]   ;;  %v4295_v9 = vld [vmem:[#allocation3 + $0xc4] ss:$8 sps:$4 sm:$0xff]   ;;  %v4297_v10 = vld [vmem:[#allocation3 + $0xc0] ss:$8 sps:$4 sm:$0xff]  }
  0x68   : > { %v4298_v11 = vld [vmem:[#allocation3 + $0xd4] ss:$8 sps:$4 sm:$0xff]   ;;  %v4300_v12 = vld [vmem:[#allocation3 + $0xd0] ss:$8 sps:$4 sm:$0xff]   ;;  %v4301_v13 = vld [vmem:[#allocation3 + $0xe4] ss:$8 sps:$4 sm:$0xff]  }
  0x69   : > { %1744 = vmatpush1.bf16.msra.mxu1 %v4221_v20  ;;  %1391 = vmatpush1.bf16.msra.mxu0 %v4222_v21  ;;  %v4303_v14 = vld [vmem:[#allocation3 + $0xe0] ss:$8 sps:$4 sm:$0xff]   ;;  %v4304_v15 = vld [vmem:[#allocation3 + $0xf4] ss:$8 sps:$4 sm:$0xff]   ;;  %v4306_v16 = vld [vmem:[#allocation3 + $0xf0] ss:$8 sps:$4 sm:$0xff]  }
  0x6a   : > { %1745 = vmatprep.subr.bf16.mxu1 %v4531_v0  ;;  %1392 = vmatprep.subr.bf16.mxu0 %v4223_v22  ;;  %v4307_v17 = vld [vmem:[#allocation3 + $0x104] ss:$8 sps:$4 sm:$0xff]   ;;  %v4309_v18 = vld [vmem:[#allocation3 + $0x100] ss:$8 sps:$4 sm:$0xff]   ;;  %v4310_v19 = vld [vmem:[#allocation3 + $0x114] ss:$8 sps:$4 sm:$0xff]  }
  0x6b   : > { %v4312_v20 = vld [vmem:[#allocation3 + $0x110] ss:$8 sps:$4 sm:$0xff]   ;;  %v4313_v21 = vld [vmem:[#allocation3 + $0x124] ss:$8 sps:$4 sm:$0xff]   ;;  %v4315_v22 = vld [vmem:[#allocation3 + $0x120] ss:$8 sps:$4 sm:$0xff]  }
  0x6c   : > { %s250_s20 = scalar_lea.vmem [#allocation8], %s4106_s5  ;;  %s4107_s23 = smul.u32 768, %s4694_s7 }
  0x6d   : > { %1746 = vmatpush1.bf16.msra.mxu1 %v4225_v23  ;;  %1393 = vmatpush1.bf16.msra.mxu0 %v4226_v24  ;;  %v4316_v23 = vld [vmem:[#allocation3 + $0x134] ss:$8 sps:$4 sm:$0xff]   ;;  %v4318_v24 = vld [vmem:[#allocation3 + $0x130] ss:$8 sps:$4 sm:$0xff]   ;;  %s4102_s10 = smul.u32 192, %s4513_s15  ;;  %p5168_p10 = scmp.ne.s32.totalorder %s5161_s25, 0 }
  0x6e   : > { %1747 = vmatprep.subr.bf16.mxu1 %v4531_v0  ;;  %1394 = vmatprep.subr.bf16.mxu0 %v4227_v25  ;;  %v4319_v25 = vld [vmem:[#allocation3 + $0x144] ss:$8 sps:$4 sm:$0xff]   ;;  %s4778_s27 = scalar_lea.vmem [#allocation9], %s4107_s23  ;;  %s4532_s11 = smov [#allocation9]  }
  0x6f   : > { %s3593_s19 = sshll.u32 %s4778_s27, 4  ;;  %s5100_s15 = scalar_lea.hbm %s5155_s3, %s4102_s10  ;;  %s5103_s19 = int_to_ptr.vmem [resolvable:$true] %s3593_s19 }
  0x70   : > { %s4437_s9 = scalar_lea.vmem %s5103_s19, 12288  ;;  %s4441_s21 = sshll.u32 %s4532_s11, 4  ;;  %s4442_s21 = int_to_ptr.vmem [resolvable:$false] %s4441_s21 }
  0x71   : > { %1748 = vmatpush2.bf16.msra.mxu1 %v4229_v26  ;;  %1395 = vmatpush2.bf16.msra.mxu0 %v4230_v27  ;;  %v4321_v26 = vld [vmem:[#allocation3 + $0x140] ss:$8 sps:$4 sm:$0xff]   ;;  %v4322_v27 = vld [vmem:[#allocation3 + $0x154] ss:$8 sps:$4 sm:$0xff]   ;;  %p4438_p7 = scmp.ne.s32.totalorder %s5103_s19, %s4437_s9  ;;  %s4443_s30 = scalar_lea.vmem %s4442_s21, 24576 }
  0x72   : > { %1749 = vmatprep.subr.bf16.mxu1 %v4531_v0  ;;  %1396 = vmatprep.subr.bf16.mxu0 %v4231_v28  ;;  %v4324_v28 = vld [vmem:[#allocation3 + $0x150] ss:$8 sps:$4 sm:$0xff]   ;;  %p4444_p0 = scmp.lt.s32.totalorder %s5103_s19, %s4442_s21  ;;  %p4445_p3 = scmp.lt.s32.totalorder %s4443_s30, %s4437_s9 }
  0x73   : > { %p4439_p2 = pnand %p4438_p7, %p5168_p10 }
  0x74   : > { %p4446_p4 = por %p4445_p3, %p4444_p0 }
  0x75   : > { %1750 = vmatpush2.bf16.msra.mxu1 %v4233_v29  ;;  %1397 = vmatpush2.bf16.msra.mxu0 %v4234_v30  ;;  %v4325_v29 = vld [vmem:[#allocation3 + $0x164] ss:$8 sps:$4 sm:$0xff]   ;;  %v4327_v30 = vld [vmem:[#allocation3 + $0x160] ss:$8 sps:$4 sm:$0xff]   ;;  %p4440_p1 = pneg %p4439_p2 }
  0x76   : > { %1751 = vmatprep.subr.bf16.mxu1 %v4531_v0  ;;  %1398 = vmatprep.subr.bf16.mxu0 %v4235_v31  ;;  %v4328_v31 = vld [vmem:[#allocation3 + $0x174] ss:$8 sps:$4 sm:$0xff]  }
  0x77   : > { %p4447_p6 = pnand %p4446_p4, %p4440_p1 }
  0x79   : > { %1752 = vmatpush2.bf16.msra.mxu1 %v4237_v33  ;;  %1399 = vmatpush2.bf16.msra.mxu0 %v4238_v34  ;;  %v4330_v33 = vld [vmem:[#allocation3 + $0x170] ss:$8 sps:$4 sm:$0xff]   ;;  %v4331_v34 = vld [vmem:[#allocation3 + $0x184] ss:$8 sps:$4 sm:$0xff]  }
  0x7a   : > { %1753 = vmatprep.subr.bf16.mxu1 %v4531_v0  ;;  %1400 = vmatprep.subr.bf16.mxu0 %v4239_v35  ;;  %v2602_v35 = vshrl.u32 %v2601_v32, 7 }
  0x7d   : > { %1754 = vmatpush2.bf16.msra.mxu1 %v4241_v36  ;;  %1401 = vmatpush2.bf16.msra.mxu0 %v4242_v37  ;;  %v2611_v36 = vsub.s32 2, %v2602_v35  ;;  %v2599_v37 = vld [vmem:[%s250_s20] sm:$0x7] }
  0x7e   : > { %1755 = vmatprep.subr.bf16.mxu1 %v4531_v0  ;;  %1402 = vmatprep.subr.bf16.mxu0 %v4243_v38  ;;  %v4333_v38 = vld [vmem:[#allocation3 + $0x180] ss:$8 sps:$4 sm:$0xff]  }
  0x81   : > { %1756 = vmatpush2.bf16.msra.mxu1 %v4245_v39  ;;  %1403 = vmatpush2.bf16.msra.mxu0 %v4246_v40  ;;  %v2603_v39 = vsub.s32 0, %v2602_v35  ;;  %v2607_v40 = vsub.s32 1, %v2602_v35 }
  0x82   : > { %1757 = vmatprep.subr.bf16.mxu1 %v4531_v0  ;;  %1404 = vmatprep.subr.bf16.mxu0 %v4247_v41  ;;  %v4768_v41 = vrot.slane %v2599_v37, %v2611_v36 }
  0x85   : > { %1758 = vmatpush2.bf16.msra.mxu1 %v4249_v42  ;;  %1405 = vmatpush2.bf16.msra.mxu0 %v4250_v43  ;;  %v4334_v42 = vld [vmem:[#allocation3 + $0x194] ss:$8 sps:$4 sm:$0xff]  }
  0x86   : > { %1759 = vmatprep.subr.bf16.mxu1 %v4531_v0  ;;  %1406 = vmatprep.subr.bf16.mxu0 %v4251_v44  ;;  %v4771_v44 = vrot.slane %v2599_v37, %v2603_v39 }
  0x89   : > { %1760 = vmatpush2.bf16.msra.mxu1 %v4253_v45  ;;  %1407 = vmatpush2.bf16.msra.mxu0 %v4254_v46  ;;  %v4773_v45 = vrot.slane %v2599_v37, %v2607_v40 }
  0x8a   : > { %1761 = vmatprep.subr.bf16.mxu1 %v4531_v0  ;;  %1408 = vmatprep.subr.bf16.mxu0 %v4255_v47  ;;  %v4282_v0 = vld [vmem:[#allocation3 + $0x70] ss:$8 sps:$4 sm:$0xff]  }
  0x8d   : > { %1762 = vmatpush2.bf16.msra.mxu1 %v4257_v48  ;;  %1409 = vmatpush2.bf16.msra.mxu0 %v4258_v49 }
  0x90   : > { %1764 = vmatmul.mubr.bf16.vlgmr.msra.gmra.mxu1 %v4259_v50  ;;  %1411 = vmatmul.mubr.bf16.vlgmr.msra.gmra.mxu0 %v4259_v50 }
  0x91   : > { %1771 = vmatprep.mubr.bf16.mxu1 %v4262_v51  ;;  %1420 = vmatprep.mubr.bf16.mxu0 %v4262_v51 }
  0x98   : > { %1772 = vmatmul.mubr.bf16.gmra.mxu1 %v4264_v52  ;;  %1421 = vmatmul.mubr.bf16.gmra.mxu0 %v4264_v52 }
  0x99   : > { %1779 = vmatprep.mubr.bf16.mxu1 %v4265_v53  ;;  %1430 = vmatprep.mubr.bf16.mxu0 %v4265_v53 }
  0xa0   : > { %1780 = vmatmul.mubr.bf16.gmra.mxu1 %v4267_v54  ;;  %1431 = vmatmul.mubr.bf16.gmra.mxu0 %v4267_v54  ;;  %v4336_v54 = vld [vmem:[#allocation3 + $0x190] ss:$8 sps:$4 sm:$0xff]  }
  0xa1   : > { %1787 = vmatprep.mubr.bf16.mxu1 %v4268_v55  ;;  %1440 = vmatprep.mubr.bf16.mxu0 %v4268_v55 }
  0xa8   : > { %1788 = vmatmul.mubr.bf16.gmra.mxu1 %v4270_v56  ;;  %1441 = vmatmul.mubr.bf16.gmra.mxu0 %v4270_v56 }
  0xa9   : > { %1795 = vmatprep.mubr.bf16.mxu1 %v4271_v57  ;;  %1450 = vmatprep.mubr.bf16.mxu0 %v4271_v57  ;;  %v4337_v57 = vld [vmem:[#allocation3 + $0x1a4] ss:$8 sps:$4 sm:$0xff]  }
  0xb0   : > { %1796 = vmatmul.mubr.bf16.gmra.mxu1 %v4273_v58  ;;  %1451 = vmatmul.mubr.bf16.gmra.mxu0 %v4273_v58 }
  0xb1   : > { %1803 = vmatprep.mubr.bf16.mxu1 %v4274_v59  ;;  %1460 = vmatprep.mubr.bf16.mxu0 %v4274_v59 }
  0xb8   : > { %1804 = vmatmul.mubr.bf16.gmra.mxu1 %v4276_v60  ;;  %1461 = vmatmul.mubr.bf16.gmra.mxu0 %v4276_v60 }
  0xb9   : > { %1811 = vmatprep.mubr.bf16.mxu1 %v4277_v61  ;;  %1470 = vmatprep.mubr.bf16.mxu0 %v4277_v61 }
  0xc0   : > { %1812 = vmatmul.mubr.bf16.gmra.mxu1 %v4279_v62  ;;  %1471 = vmatmul.mubr.bf16.gmra.mxu0 %v4279_v62 }
  0xc1   : > { %1819 = vmatprep.mubr.bf16.mxu1 %v4280_v63  ;;  %1480 = vmatprep.mubr.bf16.mxu0 %v4280_v63 }
  0xc8   : > { %1820 = vmatmul.mubr.bf16.gmra.mxu1 %v4282_v0  ;;  %1481 = vmatmul.mubr.bf16.gmra.mxu0 %v4282_v0 }
  0xc9   : > { %1827 = vmatprep.mubr.bf16.mxu1 %v4283_v1  ;;  %1490 = vmatprep.mubr.bf16.mxu0 %v4283_v1 }
  0xd0   : > { %1828 = vmatmul.mubr.bf16.gmra.mxu1 %v4285_v2  ;;  %1491 = vmatmul.mubr.bf16.gmra.mxu0 %v4285_v2 }
  0xd1   : > { %1835 = vmatprep.mubr.bf16.mxu1 %v4286_v3  ;;  %1500 = vmatprep.mubr.bf16.mxu0 %v4286_v3 }
  0xd8   : > { %1836 = vmatmul.mubr.bf16.gmra.mxu1 %v4288_v4  ;;  %1501 = vmatmul.mubr.bf16.gmra.mxu0 %v4288_v4 }
  0xd9   : > { %1843 = vmatprep.mubr.bf16.mxu1 %v4289_v5  ;;  %1510 = vmatprep.mubr.bf16.mxu0 %v4289_v5 }
  0xe0   : > { %1844 = vmatmul.mubr.bf16.gmra.mxu1 %v4291_v6  ;;  %1511 = vmatmul.mubr.bf16.gmra.mxu0 %v4291_v6 }
  0xe1   : > { %1851 = vmatprep.mubr.bf16.mxu1 %v4292_v7  ;;  %1520 = vmatprep.mubr.bf16.mxu0 %v4292_v7 }
  0xe8   : > { %1852 = vmatmul.mubr.bf16.gmra.mxu1 %v4294_v8  ;;  %1521 = vmatmul.mubr.bf16.gmra.mxu0 %v4294_v8 }
  0xe9   : > { %1859 = vmatprep.mubr.bf16.mxu1 %v4295_v9  ;;  %1530 = vmatprep.mubr.bf16.mxu0 %v4295_v9 }
  0xf0   : > { %1860 = vmatmul.mubr.bf16.gmra.mxu1 %v4297_v10  ;;  %1531 = vmatmul.mubr.bf16.gmra.mxu0 %v4297_v10  ;;  %v4339_v10 = vld [vmem:[#allocation3 + $0x1a0] ss:$8 sps:$4 sm:$0xff]  }
  0xf1   : > { %1867 = vmatprep.mubr.bf16.mxu1 %v4298_v11  ;;  %1540 = vmatprep.mubr.bf16.mxu0 %v4298_v11 }
  0xf8   : > { %1868 = vmatmul.mubr.bf16.gmra.mxu1 %v4300_v12  ;;  %1541 = vmatmul.mubr.bf16.gmra.mxu0 %v4300_v12 }
  0xf9   : > { %1875 = vmatprep.mubr.bf16.mxu1 %v4301_v13  ;;  %1550 = vmatprep.mubr.bf16.mxu0 %v4301_v13  ;;  %v4340_v13 = vld [vmem:[#allocation3 + $0x1b4] ss:$8 sps:$4 sm:$0xff]  }
 0x100   : > { %1876 = vmatmul.mubr.bf16.gmra.mxu1 %v4303_v14  ;;  %1551 = vmatmul.mubr.bf16.gmra.mxu0 %v4303_v14 }
 0x101   : > { %1883 = vmatprep.mubr.bf16.mxu1 %v4304_v15  ;;  %1560 = vmatprep.mubr.bf16.mxu0 %v4304_v15 }
 0x108   : > { %1884 = vmatmul.mubr.bf16.gmra.mxu1 %v4306_v16  ;;  %1561 = vmatmul.mubr.bf16.gmra.mxu0 %v4306_v16 }
 0x109   : > { %1891 = vmatprep.mubr.bf16.mxu1 %v4307_v17  ;;  %1570 = vmatprep.mubr.bf16.mxu0 %v4307_v17 }
 0x110   : > { %1892 = vmatmul.mubr.bf16.gmra.mxu1 %v4309_v18  ;;  %1571 = vmatmul.mubr.bf16.gmra.mxu0 %v4309_v18 }
 0x111   : > { %1899 = vmatprep.mubr.bf16.mxu1 %v4310_v19  ;;  %1580 = vmatprep.mubr.bf16.mxu0 %v4310_v19 }
 0x118   : > { %1900 = vmatmul.mubr.bf16.gmra.mxu1 %v4312_v20  ;;  %1581 = vmatmul.mubr.bf16.gmra.mxu0 %v4312_v20 }
 0x119   : > { %1907 = vmatprep.mubr.bf16.mxu1 %v4313_v21  ;;  %1590 = vmatprep.mubr.bf16.mxu0 %v4313_v21 }
 0x120   : > { %1908 = vmatmul.mubr.bf16.gmra.mxu1 %v4315_v22  ;;  %1591 = vmatmul.mubr.bf16.gmra.mxu0 %v4315_v22 }
 0x121   : > { %1915 = vmatprep.mubr.bf16.mxu1 %v4316_v23  ;;  %1600 = vmatprep.mubr.bf16.mxu0 %v4316_v23 }
 0x128   : > { %1916 = vmatmul.mubr.bf16.gmra.mxu1 %v4318_v24  ;;  %1601 = vmatmul.mubr.bf16.gmra.mxu0 %v4318_v24 }
 0x129   : > { %1923 = vmatprep.mubr.bf16.mxu1 %v4319_v25  ;;  %1610 = vmatprep.mubr.bf16.mxu0 %v4319_v25 }
 0x130   : > { %1924 = vmatmul.mubr.bf16.gmra.mxu1 %v4321_v26  ;;  %1611 = vmatmul.mubr.bf16.gmra.mxu0 %v4321_v26 }
 0x131   : > { %1931 = vmatprep.mubr.bf16.mxu1 %v4322_v27  ;;  %1620 = vmatprep.mubr.bf16.mxu0 %v4322_v27 }
 0x138   : > { %1932 = vmatmul.mubr.bf16.gmra.mxu1 %v4324_v28  ;;  %1621 = vmatmul.mubr.bf16.gmra.mxu0 %v4324_v28 }
 0x139   : > { %1939 = vmatprep.mubr.bf16.mxu1 %v4325_v29  ;;  %1630 = vmatprep.mubr.bf16.mxu0 %v4325_v29 }
 0x140   : > { %1940 = vmatmul.mubr.bf16.gmra.mxu1 %v4327_v30  ;;  %1631 = vmatmul.mubr.bf16.gmra.mxu0 %v4327_v30  ;;  %v4342_v30 = vld [vmem:[#allocation3 + $0x1b0] ss:$8 sps:$4 sm:$0xff]  }
 0x141   : > { %1947 = vmatprep.mubr.bf16.mxu1 %v4328_v31  ;;  %1640 = vmatprep.mubr.bf16.mxu0 %v4328_v31 }
 0x148   : > { %1948 = vmatmul.mubr.bf16.gmra.mxu1 %v4330_v33  ;;  %1641 = vmatmul.mubr.bf16.gmra.mxu0 %v4330_v33  ;;  %v4345_v33 = vld [vmem:[#allocation3 + $0x1c4] ss:$8 sps:$4 sm:$0xff]  }
 0x149   : > { %1955 = vmatprep.mubr.bf16.mxu1 %v4331_v34  ;;  %1650 = vmatprep.mubr.bf16.mxu0 %v4331_v34 }
 0x150   : > { %v1765_v43 = vpop.f32.mrf.mxu1  ;;  %1956 = vmatmul.mubr.bf16.gmra.mxu1 %v4333_v38  ;;  %v1412_v47 = vpop.f32.mrf.mxu0  ;;  %1651 = vmatmul.mubr.bf16.gmra.mxu0 %v4333_v38 }
 0x151   : > { %v2618_v46 = vadd.f32 %v4768_v41, %v1765_v43  ;;  %1963 = vmatprep.mubr.bf16.mxu1 %v4334_v42  ;;  %1660 = vmatprep.mubr.bf16.mxu0 %v4334_v42  ;;  %v2616_v51 = vadd.f32 %v4771_v44, %v1412_v47 }
 0x152   : > { %v1767_v48 = vpop.f32.mrf.mxu1  ;;  %v1414_v50 = vpop.f32.mrf.mxu0 }
 0x153   : > { %v3975_v49 = vpack.c.bf16 %v2618_v46, %v2618_v46  ;;  %v2617_v52 = vadd.f32 %v4773_v45, %v1414_v50 }
 0x154   : > { %v1768_v53 = vpop.f32.mrf.mxu1  ;;  %v1416_v56 = vpop.f32.mrf.mxu0 }
 0x155   : > { %3449 = vst [vmem:[%s4778_s27 + $0x8] sm:$0xf] %v3975_v49  ;;  %v2621_v55 = vadd.f32 %v4768_v41, %v1768_v53  ;;  %v3974_v58 = vpack.c.bf16 %v2617_v52, %v2616_v51  ;;  %v2619_v62 = vadd.f32 %v4771_v44, %v1416_v56  ;;  %v4343_v53 = vld [vmem:[#allocation3 + $0x1c0] ss:$8 sps:$4 sm:$0xff]   ;;  %v4348_v56 = vld [vmem:[#allocation3 + $0x1d4] ss:$8 sps:$4 sm:$0xff]  }
 0x156   : > { %v1770_v59 = vpop.f32.mrf.mxu1  ;;  %v1418_v61 = vpop.f32.mrf.mxu0 }
 0x157   : > { %v3977_v60 = vpack.c.bf16 %v2621_v55, %v2621_v55  ;;  %3448 = vst [vmem:[%s4778_s27] sm:$0xff] %v3974_v58  ;;  %v2620_v63 = vadd.f32 %v4773_v45, %v1418_v61 }
 0x158   : > { %v1773_v0 = vpop.f32.mrf.mxu1  ;;  %1964 = vmatmul.mubr.bf16.gmra.mxu1 %v4336_v54  ;;  %v1422_v2 = vpop.f32.mrf.mxu0  ;;  %1661 = vmatmul.mubr.bf16.gmra.mxu0 %v4336_v54 }
 0x159   : > { %3451 = vst [vmem:[%s4778_s27 + $0x14] sm:$0xf] %v3977_v60  ;;  %v2624_v1 = vadd.f32 %v4768_v41, %v1773_v0  ;;  %1971 = vmatprep.mubr.bf16.mxu1 %v4337_v57  ;;  %v3976_v3 = vpack.c.bf16 %v2620_v63, %v2619_v62  ;;  %1670 = vmatprep.mubr.bf16.mxu0 %v4337_v57 }
 0x15a   : > { %v1775_v4 = vpop.f32.mrf.mxu1  ;;  %v1424_v6 = vpop.f32.mrf.mxu0  ;;  %v2622_v7 = vadd.f32 %v4771_v44, %v1422_v2 }
 0x15b   : > { %v3979_v5 = vpack.c.bf16 %v2624_v1, %v2624_v1  ;;  %3450 = vst [vmem:[%s4778_s27 + $0xc] sm:$0xff] %v3976_v3  ;;  %v2623_v8 = vadd.f32 %v4773_v45, %v1424_v6 }
 0x15c   : > { %v1776_v9 = vpop.f32.mrf.mxu1  ;;  %v1426_v12 = vpop.f32.mrf.mxu0 }
 0x15d   : > { %3453 = vst [vmem:[%s4778_s27 + $0x20] sm:$0xf] %v3979_v5  ;;  %v2627_v11 = vadd.f32 %v4768_v41, %v1776_v9  ;;  %v3978_v14 = vpack.c.bf16 %v2623_v8, %v2622_v7  ;;  %v2625_v18 = vadd.f32 %v4771_v44, %v1426_v12  ;;  %v4346_v9 = vld [vmem:[#allocation3 + $0x1d0] ss:$8 sps:$4 sm:$0xff]   ;;  %v4351_v12 = vld [vmem:[#allocation3 + $0x1e4] ss:$8 sps:$4 sm:$0xff]  }
 0x15e   : > { %v1778_v15 = vpop.f32.mrf.mxu1  ;;  %v1428_v17 = vpop.f32.mrf.mxu0 }
 0x15f   : > { %v3981_v16 = vpack.c.bf16 %v2627_v11, %v2627_v11  ;;  %3452 = vst [vmem:[%s4778_s27 + $0x18] sm:$0xff] %v3978_v14  ;;  %v2626_v19 = vadd.f32 %v4773_v45, %v1428_v17 }
 0x160   : > { %v1781_v20 = vpop.f32.mrf.mxu1  ;;  %1972 = vmatmul.mubr.bf16.gmra.mxu1 %v4339_v10  ;;  %v1432_v22 = vpop.f32.mrf.mxu0  ;;  %1671 = vmatmul.mubr.bf16.gmra.mxu0 %v4339_v10 }
 0x161   : > { %3455 = vst [vmem:[%s4778_s27 + $0x2c] sm:$0xf] %v3981_v16  ;;  %v2630_v21 = vadd.f32 %v4768_v41, %v1781_v20  ;;  %1979 = vmatprep.mubr.bf16.mxu1 %v4340_v13  ;;  %v3980_v23 = vpack.c.bf16 %v2626_v19, %v2625_v18  ;;  %1680 = vmatprep.mubr.bf16.mxu0 %v4340_v13 }
 0x162   : > { %v1783_v24 = vpop.f32.mrf.mxu1  ;;  %v1434_v26 = vpop.f32.mrf.mxu0  ;;  %v2628_v27 = vadd.f32 %v4771_v44, %v1432_v22 }
 0x163   : > { %v3983_v25 = vpack.c.bf16 %v2630_v21, %v2630_v21  ;;  %3454 = vst [vmem:[%s4778_s27 + $0x24] sm:$0xff] %v3980_v23  ;;  %v2629_v28 = vadd.f32 %v4773_v45, %v1434_v26 }
 0x164   : > { %v1784_v29 = vpop.f32.mrf.mxu1  ;;  %v1436_v32 = vpop.f32.mrf.mxu0 }
 0x165   : > { %3457 = vst [vmem:[%s4778_s27 + $0x38] sm:$0xf] %v3983_v25  ;;  %v2633_v31 = vadd.f32 %v4768_v41, %v1784_v29  ;;  %v3982_v34 = vpack.c.bf16 %v2629_v28, %v2628_v27  ;;  %v2631_v38 = vadd.f32 %v4771_v44, %v1436_v32  ;;  %v4349_v29 = vld [vmem:[#allocation3 + $0x1e0] ss:$8 sps:$4 sm:$0xff]   ;;  %v4354_v32 = vld [vmem:[#allocation3 + $0x1f4] ss:$8 sps:$4 sm:$0xff]  }
 0x166   : > { %v1786_v35 = vpop.f32.mrf.mxu1  ;;  %v1438_v37 = vpop.f32.mrf.mxu0 }
 0x167   : > { %v3985_v36 = vpack.c.bf16 %v2633_v31, %v2633_v31  ;;  %3456 = vst [vmem:[%s4778_s27 + $0x30] sm:$0xff] %v3982_v34  ;;  %v2632_v39 = vadd.f32 %v4773_v45, %v1438_v37 }
 0x168   : > { %v1789_v40 = vpop.f32.mrf.mxu1  ;;  %1980 = vmatmul.mubr.bf16.gmra.mxu1 %v4342_v30  ;;  %v1442_v43 = vpop.f32.mrf.mxu0  ;;  %1681 = vmatmul.mubr.bf16.gmra.mxu0 %v4342_v30 }
 0x169   : > { %3459 = vst [vmem:[%s4778_s27 + $0x44] sm:$0xf] %v3985_v36  ;;  %v2636_v42 = vadd.f32 %v4768_v41, %v1789_v40  ;;  %1987 = vmatprep.mubr.bf16.mxu1 %v4345_v33  ;;  %v3984_v46 = vpack.c.bf16 %v2632_v39, %v2631_v38  ;;  %1690 = vmatprep.mubr.bf16.mxu0 %v4345_v33 }
 0x16a   : > { %v1791_v47 = vpop.f32.mrf.mxu1  ;;  %v1444_v49 = vpop.f32.mrf.mxu0  ;;  %v2634_v50 = vadd.f32 %v4771_v44, %v1442_v43 }
 0x16b   : > { %v3987_v48 = vpack.c.bf16 %v2636_v42, %v2636_v42  ;;  %3458 = vst [vmem:[%s4778_s27 + $0x3c] sm:$0xff] %v3984_v46  ;;  %v2635_v51 = vadd.f32 %v4773_v45, %v1444_v49 }
 0x16c   : > { %v1792_v52 = vpop.f32.mrf.mxu1  ;;  %v1446_v55 = vpop.f32.mrf.mxu0 }
 0x16d   : > { %3461 = vst [vmem:[%s4778_s27 + $0x50] sm:$0xf] %v3987_v48  ;;  %v2639_v54 = vadd.f32 %v4768_v41, %v1792_v52  ;;  %v3986_v57 = vpack.c.bf16 %v2635_v51, %v2634_v50  ;;  %v2637_v61 = vadd.f32 %v4771_v44, %v1446_v55  ;;  %v4352_v52 = vld [vmem:[#allocation3 + $0x1f0] ss:$8 sps:$4 sm:$0xff]  }
 0x16e   : > { %v1794_v58 = vpop.f32.mrf.mxu1  ;;  %v1448_v60 = vpop.f32.mrf.mxu0 }
 0x16f   : > { %v3989_v59 = vpack.c.bf16 %v2639_v54, %v2639_v54  ;;  %3460 = vst [vmem:[%s4778_s27 + $0x48] sm:$0xff] %v3986_v57  ;;  %v2638_v62 = vadd.f32 %v4773_v45, %v1448_v60 }
 0x170   : > { %v1797_v63 = vpop.f32.mrf.mxu1  ;;  %1988 = vmatmul.mubr.bf16.gmra.mxu1 %v4343_v53  ;;  %v1452_v1 = vpop.f32.mrf.mxu0  ;;  %1691 = vmatmul.mubr.bf16.gmra.mxu0 %v4343_v53 }
 0x171   : > { %3463 = vst [vmem:[%s4778_s27 + $0x5c] sm:$0xf] %v3989_v59  ;;  %v2642_v0 = vadd.f32 %v4768_v41, %v1797_v63  ;;  %1995 = vmatprep.mubr.bf16.mxu1 %v4348_v56  ;;  %v3988_v2 = vpack.c.bf16 %v2638_v62, %v2637_v61  ;;  %1700 = vmatprep.mubr.bf16.mxu0 %v4348_v56 }
 0x172   : > { %v1799_v3 = vpop.f32.mrf.mxu1  ;;  %v1454_v5 = vpop.f32.mrf.mxu0  ;;  %v2640_v6 = vadd.f32 %v4771_v44, %v1452_v1 }
 0x173   : > { %v3991_v4 = vpack.c.bf16 %v2642_v0, %v2642_v0  ;;  %3462 = vst [vmem:[%s4778_s27 + $0x54] sm:$0xff] %v3988_v2  ;;  %v2641_v7 = vadd.f32 %v4773_v45, %v1454_v5 }
 0x174   : > { %v1800_v8 = vpop.f32.mrf.mxu1  ;;  %v1456_v11 = vpop.f32.mrf.mxu0 }
 0x175   : > { %3465 = vst [vmem:[%s4778_s27 + $0x68] sm:$0xf] %v3991_v4  ;;  %v2645_v10 = vadd.f32 %v4768_v41, %v1800_v8  ;;  %v3990_v13 = vpack.c.bf16 %v2641_v7, %v2640_v6  ;;  %v2643_v17 = vadd.f32 %v4771_v44, %v1456_v11 }
 0x176   : > { %v1802_v14 = vpop.f32.mrf.mxu1  ;;  %v1458_v16 = vpop.f32.mrf.mxu0 }
 0x177   : > { %v3993_v15 = vpack.c.bf16 %v2645_v10, %v2645_v10  ;;  %3464 = vst [vmem:[%s4778_s27 + $0x60] sm:$0xff] %v3990_v13  ;;  %v2644_v18 = vadd.f32 %v4773_v45, %v1458_v16 }
 0x178   : > { %v1805_v19 = vpop.f32.mrf.mxu1  ;;  %1996 = vmatmul.mubr.bf16.gmra.mxu1 %v4346_v9  ;;  %v1462_v21 = vpop.f32.mrf.mxu0  ;;  %1701 = vmatmul.mubr.bf16.gmra.mxu0 %v4346_v9 }
 0x179   : > { %3467 = vst [vmem:[%s4778_s27 + $0x74] sm:$0xf] %v3993_v15  ;;  %v2648_v20 = vadd.f32 %v4768_v41, %v1805_v19  ;;  %2003 = vmatprep.mubr.bf16.mxu1 %v4351_v12  ;;  %v3992_v22 = vpack.c.bf16 %v2644_v18, %v2643_v17  ;;  %1710 = vmatprep.mubr.bf16.mxu0 %v4351_v12 }
 0x17a   : > { %v1807_v23 = vpop.f32.mrf.mxu1  ;;  %v1464_v25 = vpop.f32.mrf.mxu0  ;;  %v2646_v26 = vadd.f32 %v4771_v44, %v1462_v21 }
 0x17b   : > { %v3995_v24 = vpack.c.bf16 %v2648_v20, %v2648_v20  ;;  %3466 = vst [vmem:[%s4778_s27 + $0x6c] sm:$0xff] %v3992_v22  ;;  %v2647_v27 = vadd.f32 %v4773_v45, %v1464_v25 }
 0x17c   : > { %v1808_v28 = vpop.f32.mrf.mxu1  ;;  %v1466_v31 = vpop.f32.mrf.mxu0 }
 0x17d   : > { %3469 = vst [vmem:[%s4778_s27 + $0x80] sm:$0xf] %v3995_v24  ;;  %v2651_v30 = vadd.f32 %v4768_v41, %v1808_v28  ;;  %v3994_v33 = vpack.c.bf16 %v2647_v27, %v2646_v26  ;;  %v2649_v37 = vadd.f32 %v4771_v44, %v1466_v31 }
 0x17e   : > { %v1810_v34 = vpop.f32.mrf.mxu1  ;;  %v1468_v36 = vpop.f32.mrf.mxu0 }
 0x17f   : > { %v3997_v35 = vpack.c.bf16 %v2651_v30, %v2651_v30  ;;  %3468 = vst [vmem:[%s4778_s27 + $0x78] sm:$0xff] %v3994_v33  ;;  %v2650_v38 = vadd.f32 %v4773_v45, %v1468_v36 }
 0x180   : > { %v1813_v39 = vpop.f32.mrf.mxu1  ;;  %2004 = vmatmul.mubr.bf16.gmra.mxu1 %v4349_v29  ;;  %v1472_v42 = vpop.f32.mrf.mxu0  ;;  %1711 = vmatmul.mubr.bf16.gmra.mxu0 %v4349_v29 }
 0x181   : > { %3471 = vst [vmem:[%s4778_s27 + $0x8c] sm:$0xf] %v3997_v35  ;;  %v2654_v40 = vadd.f32 %v4768_v41, %v1813_v39  ;;  %2011 = vmatprep.mubr.bf16.mxu1 %v4354_v32  ;;  %v3996_v43 = vpack.c.bf16 %v2650_v38, %v2649_v37  ;;  %1720 = vmatprep.mubr.bf16.mxu0 %v4354_v32 }
 0x182   : > { %v1815_v46 = vpop.f32.mrf.mxu1  ;;  %v1474_v48 = vpop.f32.mrf.mxu0  ;;  %v2652_v49 = vadd.f32 %v4771_v44, %v1472_v42 }
 0x183   : > { %v3999_v47 = vpack.c.bf16 %v2654_v40, %v2654_v40  ;;  %3470 = vst [vmem:[%s4778_s27 + $0x84] sm:$0xff] %v3996_v43  ;;  %v2653_v50 = vadd.f32 %v4773_v45, %v1474_v48 }
 0x184   : > { %v1816_v51 = vpop.f32.mrf.mxu1  ;;  %v1476_v54 = vpop.f32.mrf.mxu0 }
 0x185   : > { %3473 = vst [vmem:[%s4778_s27 + $0x98] sm:$0xf] %v3999_v47  ;;  %v2657_v53 = vadd.f32 %v4768_v41, %v1816_v51  ;;  %v3998_v55 = vpack.c.bf16 %v2653_v50, %v2652_v49  ;;  %v2655_v59 = vadd.f32 %v4771_v44, %v1476_v54 }
 0x186   : > { %v1818_v56 = vpop.f32.mrf.mxu1  ;;  %v1478_v58 = vpop.f32.mrf.mxu0 }
 0x187   : > { %v4001_v57 = vpack.c.bf16 %v2657_v53, %v2657_v53  ;;  %3472 = vst [vmem:[%s4778_s27 + $0x90] sm:$0xff] %v3998_v55  ;;  %v2656_v60 = vadd.f32 %v4773_v45, %v1478_v58 }
 0x188   : > { %v1821_v61 = vpop.f32.mrf.mxu1  ;;  %2012 = vmatmul.mubr.bf16.gmra.mxu1 %v4352_v52  ;;  %v1482_v63 = vpop.f32.mrf.mxu0  ;;  %1721 = vmatmul.mubr.bf16.gmra.mxu0 %v4352_v52 }
 0x189   : > { %3475 = vst [vmem:[%s4778_s27 + $0xa4] sm:$0xf] %v4001_v57  ;;  %v2660_v62 = vadd.f32 %v4768_v41, %v1821_v61  ;;  %v4000_v0 = vpack.c.bf16 %v2656_v60, %v2655_v59  ;;  %v2658_v4 = vadd.f32 %v4771_v44, %v1482_v63 }
 0x18a   : > { %v1823_v1 = vpop.f32.mrf.mxu1  ;;  %v1484_v3 = vpop.f32.mrf.mxu0 }
 0x18b   : > { %v4003_v2 = vpack.c.bf16 %v2660_v62, %v2660_v62  ;;  %3474 = vst [vmem:[%s4778_s27 + $0x9c] sm:$0xff] %v4000_v0  ;;  %v2659_v5 = vadd.f32 %v4773_v45, %v1484_v3 }
 0x18c   : > { %v1824_v6 = vpop.f32.mrf.mxu1  ;;  %v1486_v8 = vpop.f32.mrf.mxu0 }
 0x18d   : > { %3477 = vst [vmem:[%s4778_s27 + $0xb0] sm:$0xf] %v4003_v2  ;;  %v2663_v7 = vadd.f32 %v4768_v41, %v1824_v6  ;;  %v4002_v9 = vpack.c.bf16 %v2659_v5, %v2658_v4  ;;  %v2661_v13 = vadd.f32 %v4771_v44, %v1486_v8 }
 0x18e   : > { %v1826_v10 = vpop.f32.mrf.mxu1  ;;  %v1488_v12 = vpop.f32.mrf.mxu0 }
 0x18f   : > { %v4005_v11 = vpack.c.bf16 %v2663_v7, %v2663_v7  ;;  %3476 = vst [vmem:[%s4778_s27 + $0xa8] sm:$0xff] %v4002_v9  ;;  %v2662_v14 = vadd.f32 %v4773_v45, %v1488_v12 }
 0x190   : > { %v1829_v15 = vpop.f32.mrf.mxu1  ;;  %v1492_v17 = vpop.f32.mrf.mxu0 }
 0x191   : > { %3479 = vst [vmem:[%s4778_s27 + $0xbc] sm:$0xf] %v4005_v11  ;;  %v2666_v16 = vadd.f32 %v4768_v41, %v1829_v15  ;;  %v4004_v18 = vpack.c.bf16 %v2662_v14, %v2661_v13  ;;  %v2664_v22 = vadd.f32 %v4771_v44, %v1492_v17 }
 0x192   : > { %v1831_v19 = vpop.f32.mrf.mxu1  ;;  %v1494_v21 = vpop.f32.mrf.mxu0 }
 0x193   : > { %v4007_v20 = vpack.c.bf16 %v2666_v16, %v2666_v16  ;;  %3478 = vst [vmem:[%s4778_s27 + $0xb4] sm:$0xff] %v4004_v18  ;;  %v2665_v23 = vadd.f32 %v4773_v45, %v1494_v21 }
 0x194   : > { %v1832_v24 = vpop.f32.mrf.mxu1  ;;  %v1496_v26 = vpop.f32.mrf.mxu0 }
 0x195   : > { %3481 = vst [vmem:[%s4778_s27 + $0xc8] sm:$0xf] %v4007_v20  ;;  %v2669_v25 = vadd.f32 %v4768_v41, %v1832_v24  ;;  %v4006_v27 = vpack.c.bf16 %v2665_v23, %v2664_v22  ;;  %v2667_v31 = vadd.f32 %v4771_v44, %v1496_v26 }
 0x196   : > { %v1834_v28 = vpop.f32.mrf.mxu1  ;;  %v1498_v30 = vpop.f32.mrf.mxu0 }
 0x197   : > { %v4009_v29 = vpack.c.bf16 %v2669_v25, %v2669_v25  ;;  %3480 = vst [vmem:[%s4778_s27 + $0xc0] sm:$0xff] %v4006_v27  ;;  %v2668_v32 = vadd.f32 %v4773_v45, %v1498_v30 }
 0x198   : > { %v1837_v33 = vpop.f32.mrf.mxu1  ;;  %v1502_v35 = vpop.f32.mrf.mxu0 }
 0x199   : > { %3483 = vst [vmem:[%s4778_s27 + $0xd4] sm:$0xf] %v4009_v29  ;;  %v2672_v34 = vadd.f32 %v4768_v41, %v1837_v33  ;;  %v4008_v36 = vpack.c.bf16 %v2668_v32, %v2667_v31  ;;  %v2670_v40 = vadd.f32 %v4771_v44, %v1502_v35 }
 0x19a   : > { %v1839_v37 = vpop.f32.mrf.mxu1  ;;  %v1504_v39 = vpop.f32.mrf.mxu0 }
 0x19b   : > { %v4011_v38 = vpack.c.bf16 %v2672_v34, %v2672_v34  ;;  %3482 = vst [vmem:[%s4778_s27 + $0xcc] sm:$0xff] %v4008_v36  ;;  %v2671_v42 = vadd.f32 %v4773_v45, %v1504_v39 }
 0x19c   : > { %v1840_v43 = vpop.f32.mrf.mxu1  ;;  %v1506_v47 = vpop.f32.mrf.mxu0 }
 0x19d   : > { %3485 = vst [vmem:[%s4778_s27 + $0xe0] sm:$0xf] %v4011_v38  ;;  %v2675_v46 = vadd.f32 %v4768_v41, %v1840_v43  ;;  %v4010_v48 = vpack.c.bf16 %v2671_v42, %v2670_v40  ;;  %v2673_v52 = vadd.f32 %v4771_v44, %v1506_v47 }
 0x19e   : > { %v1842_v49 = vpop.f32.mrf.mxu1  ;;  %v1508_v51 = vpop.f32.mrf.mxu0 }
 0x19f   : > { %v4013_v50 = vpack.c.bf16 %v2675_v46, %v2675_v46  ;;  %3484 = vst [vmem:[%s4778_s27 + $0xd8] sm:$0xff] %v4010_v48  ;;  %v2674_v53 = vadd.f32 %v4773_v45, %v1508_v51 }
 0x1a0   : > { %v1845_v54 = vpop.f32.mrf.mxu1  ;;  %v1512_v56 = vpop.f32.mrf.mxu0 }
 0x1a1   : > { %3487 = vst [vmem:[%s4778_s27 + $0xec] sm:$0xf] %v4013_v50  ;;  %v2678_v55 = vadd.f32 %v4768_v41, %v1845_v54  ;;  %v4012_v57 = vpack.c.bf16 %v2674_v53, %v2673_v52  ;;  %v2676_v61 = vadd.f32 %v4771_v44, %v1512_v56 }
 0x1a2   : > { %v1847_v58 = vpop.f32.mrf.mxu1  ;;  %v1514_v60 = vpop.f32.mrf.mxu0 }
 0x1a3   : > { %v4015_v59 = vpack.c.bf16 %v2678_v55, %v2678_v55  ;;  %3486 = vst [vmem:[%s4778_s27 + $0xe4] sm:$0xff] %v4012_v57  ;;  %v2677_v62 = vadd.f32 %v4773_v45, %v1514_v60 }
 0x1a4   : > { %v1848_v63 = vpop.f32.mrf.mxu1  ;;  %v1516_v1 = vpop.f32.mrf.mxu0 }
 0x1a5   : > { %3489 = vst [vmem:[%s4778_s27 + $0xf8] sm:$0xf] %v4015_v59  ;;  %v2681_v0 = vadd.f32 %v4768_v41, %v1848_v63  ;;  %v4014_v2 = vpack.c.bf16 %v2677_v62, %v2676_v61  ;;  %v2679_v6 = vadd.f32 %v4771_v44, %v1516_v1 }
 0x1a6   : > { %v1850_v3 = vpop.f32.mrf.mxu1  ;;  %v1518_v5 = vpop.f32.mrf.mxu0 }
 0x1a7   : > { %v4017_v4 = vpack.c.bf16 %v2681_v0, %v2681_v0  ;;  %3488 = vst [vmem:[%s4778_s27 + $0xf0] sm:$0xff] %v4014_v2  ;;  %v2680_v7 = vadd.f32 %v4773_v45, %v1518_v5 }
 0x1a8   : > { %v1853_v8 = vpop.f32.mrf.mxu1  ;;  %v1522_v10 = vpop.f32.mrf.mxu0 }
 0x1a9   : > { %3491 = vst [vmem:[%s4778_s27 + $0x104] sm:$0xf] %v4017_v4  ;;  %v2684_v9 = vadd.f32 %v4768_v41, %v1853_v8  ;;  %v4016_v11 = vpack.c.bf16 %v2680_v7, %v2679_v6  ;;  %v2682_v15 = vadd.f32 %v4771_v44, %v1522_v10 }
 0x1aa   : > { %v1855_v12 = vpop.f32.mrf.mxu1  ;;  %v1524_v14 = vpop.f32.mrf.mxu0 }
 0x1ab   : > { %v4019_v13 = vpack.c.bf16 %v2684_v9, %v2684_v9  ;;  %3490 = vst [vmem:[%s4778_s27 + $0xfc] sm:$0xff] %v4016_v11  ;;  %v2683_v16 = vadd.f32 %v4773_v45, %v1524_v14 }
 0x1ac   : > { %v1856_v17 = vpop.f32.mrf.mxu1  ;;  %v1526_v19 = vpop.f32.mrf.mxu0 }
 0x1ad   : > { %3493 = vst [vmem:[%s4778_s27 + $0x110] sm:$0xf] %v4019_v13  ;;  %v2687_v18 = vadd.f32 %v4768_v41, %v1856_v17  ;;  %v4018_v20 = vpack.c.bf16 %v2683_v16, %v2682_v15  ;;  %v2685_v24 = vadd.f32 %v4771_v44, %v1526_v19 }
 0x1ae   : > { %v1858_v21 = vpop.f32.mrf.mxu1  ;;  %v1528_v23 = vpop.f32.mrf.mxu0 }
 0x1af   : > { %v4021_v22 = vpack.c.bf16 %v2687_v18, %v2687_v18  ;;  %3492 = vst [vmem:[%s4778_s27 + $0x108] sm:$0xff] %v4018_v20  ;;  %v2686_v25 = vadd.f32 %v4773_v45, %v1528_v23 }
 0x1b0   : > { %v1861_v26 = vpop.f32.mrf.mxu1  ;;  %v1532_v28 = vpop.f32.mrf.mxu0 }
 0x1b1   : > { %3495 = vst [vmem:[%s4778_s27 + $0x11c] sm:$0xf] %v4021_v22  ;;  %v2690_v27 = vadd.f32 %v4768_v41, %v1861_v26  ;;  %v4020_v29 = vpack.c.bf16 %v2686_v25, %v2685_v24  ;;  %v2688_v33 = vadd.f32 %v4771_v44, %v1532_v28 }
 0x1b2   : > { %v1863_v30 = vpop.f32.mrf.mxu1  ;;  %v1534_v32 = vpop.f32.mrf.mxu0 }
 0x1b3   : > { %v4023_v31 = vpack.c.bf16 %v2690_v27, %v2690_v27  ;;  %3494 = vst [vmem:[%s4778_s27 + $0x114] sm:$0xff] %v4020_v29  ;;  %v2689_v34 = vadd.f32 %v4773_v45, %v1534_v32 }
 0x1b4   : > { %v1864_v35 = vpop.f32.mrf.mxu1  ;;  %v1536_v37 = vpop.f32.mrf.mxu0 }
 0x1b5   : > { %3497 = vst [vmem:[%s4778_s27 + $0x128] sm:$0xf] %v4023_v31  ;;  %v2693_v36 = vadd.f32 %v4768_v41, %v1864_v35  ;;  %v4022_v38 = vpack.c.bf16 %v2689_v34, %v2688_v33  ;;  %v2691_v43 = vadd.f32 %v4771_v44, %v1536_v37 }
 0x1b6   : > { %v1866_v39 = vpop.f32.mrf.mxu1  ;;  %v1538_v42 = vpop.f32.mrf.mxu0 }
 0x1b7   : > { %v4025_v40 = vpack.c.bf16 %v2693_v36, %v2693_v36  ;;  %3496 = vst [vmem:[%s4778_s27 + $0x120] sm:$0xff] %v4022_v38  ;;  %v2692_v46 = vadd.f32 %v4773_v45, %v1538_v42 }
 0x1b8   : > { %v1869_v47 = vpop.f32.mrf.mxu1  ;;  %v1542_v49 = vpop.f32.mrf.mxu0 }
 0x1b9   : > { %3499 = vst [vmem:[%s4778_s27 + $0x134] sm:$0xf] %v4025_v40  ;;  %v2696_v48 = vadd.f32 %v4768_v41, %v1869_v47  ;;  %v4024_v50 = vpack.c.bf16 %v2692_v46, %v2691_v43  ;;  %v2694_v54 = vadd.f32 %v4771_v44, %v1542_v49 }
 0x1ba   : > { %v1871_v51 = vpop.f32.mrf.mxu1  ;;  %v1544_v53 = vpop.f32.mrf.mxu0 }
 0x1bb   : > { %v4027_v52 = vpack.c.bf16 %v2696_v48, %v2696_v48  ;;  %3498 = vst [vmem:[%s4778_s27 + $0x12c] sm:$0xff] %v4024_v50  ;;  %v2695_v55 = vadd.f32 %v4773_v45, %v1544_v53 }
 0x1bc   : > { %v1872_v56 = vpop.f32.mrf.mxu1  ;;  %v1546_v58 = vpop.f32.mrf.mxu0 }
 0x1bd   : > { %3501 = vst [vmem:[%s4778_s27 + $0x140] sm:$0xf] %v4027_v52  ;;  %v2699_v57 = vadd.f32 %v4768_v41, %v1872_v56  ;;  %v4026_v59 = vpack.c.bf16 %v2695_v55, %v2694_v54  ;;  %v2697_v63 = vadd.f32 %v4771_v44, %v1546_v58 }
 0x1be   : > { %v1874_v60 = vpop.f32.mrf.mxu1  ;;  %v1548_v62 = vpop.f32.mrf.mxu0 }
 0x1bf   : > { %v4029_v61 = vpack.c.bf16 %v2699_v57, %v2699_v57  ;;  %3500 = vst [vmem:[%s4778_s27 + $0x138] sm:$0xff] %v4026_v59  ;;  %v2698_v0 = vadd.f32 %v4773_v45, %v1548_v62 }
 0x1c0   : > { %v1877_v1 = vpop.f32.mrf.mxu1  ;;  %v1552_v3 = vpop.f32.mrf.mxu0 }
 0x1c1   : > { %3503 = vst [vmem:[%s4778_s27 + $0x14c] sm:$0xf] %v4029_v61  ;;  %v2702_v2 = vadd.f32 %v4768_v41, %v1877_v1  ;;  %v4028_v4 = vpack.c.bf16 %v2698_v0, %v2697_v63  ;;  %v2700_v8 = vadd.f32 %v4771_v44, %v1552_v3 }
 0x1c2   : > { %v1879_v5 = vpop.f32.mrf.mxu1  ;;  %v1554_v7 = vpop.f32.mrf.mxu0 }
 0x1c3   : > { %v4031_v6 = vpack.c.bf16 %v2702_v2, %v2702_v2  ;;  %3502 = vst [vmem:[%s4778_s27 + $0x144] sm:$0xff] %v4028_v4  ;;  %v2701_v9 = vadd.f32 %v4773_v45, %v1554_v7 }
 0x1c4   : > { %v1880_v10 = vpop.f32.mrf.mxu1  ;;  %v1556_v12 = vpop.f32.mrf.mxu0 }
 0x1c5   : > { %3505 = vst [vmem:[%s4778_s27 + $0x158] sm:$0xf] %v4031_v6  ;;  %v2705_v11 = vadd.f32 %v4768_v41, %v1880_v10  ;;  %v4030_v13 = vpack.c.bf16 %v2701_v9, %v2700_v8  ;;  %v2703_v17 = vadd.f32 %v4771_v44, %v1556_v12 }
 0x1c6   : > { %v1882_v14 = vpop.f32.mrf.mxu1  ;;  %v1558_v16 = vpop.f32.mrf.mxu0 }
 0x1c7   : > { %v4033_v15 = vpack.c.bf16 %v2705_v11, %v2705_v11  ;;  %3504 = vst [vmem:[%s4778_s27 + $0x150] sm:$0xff] %v4030_v13  ;;  %v2704_v18 = vadd.f32 %v4773_v45, %v1558_v16 }
 0x1c8   : > { %v1885_v19 = vpop.f32.mrf.mxu1  ;;  %v1562_v21 = vpop.f32.mrf.mxu0 }
 0x1c9   : > { %3507 = vst [vmem:[%s4778_s27 + $0x164] sm:$0xf] %v4033_v15  ;;  %v2708_v20 = vadd.f32 %v4768_v41, %v1885_v19  ;;  %v4032_v22 = vpack.c.bf16 %v2704_v18, %v2703_v17  ;;  %v2706_v26 = vadd.f32 %v4771_v44, %v1562_v21 }
 0x1ca   : > { %v1887_v23 = vpop.f32.mrf.mxu1  ;;  %v1564_v25 = vpop.f32.mrf.mxu0 }
 0x1cb   : > { %v4035_v24 = vpack.c.bf16 %v2708_v20, %v2708_v20  ;;  %3506 = vst [vmem:[%s4778_s27 + $0x15c] sm:$0xff] %v4032_v22  ;;  %v2707_v27 = vadd.f32 %v4773_v45, %v1564_v25 }
 0x1cc   : > { %v1888_v28 = vpop.f32.mrf.mxu1  ;;  %v1566_v30 = vpop.f32.mrf.mxu0 }
 0x1cd   : > { %3509 = vst [vmem:[%s4778_s27 + $0x170] sm:$0xf] %v4035_v24  ;;  %v2711_v29 = vadd.f32 %v4768_v41, %v1888_v28  ;;  %v4034_v31 = vpack.c.bf16 %v2707_v27, %v2706_v26  ;;  %v2709_v35 = vadd.f32 %v4771_v44, %v1566_v30 }
 0x1ce   : > { %v1890_v32 = vpop.f32.mrf.mxu1  ;;  %v1568_v34 = vpop.f32.mrf.mxu0 }
 0x1cf   : > { %v4037_v33 = vpack.c.bf16 %v2711_v29, %v2711_v29  ;;  %3508 = vst [vmem:[%s4778_s27 + $0x168] sm:$0xff] %v4034_v31  ;;  %v2710_v36 = vadd.f32 %v4773_v45, %v1568_v34 }
 0x1d0   : > { %v1893_v37 = vpop.f32.mrf.mxu1  ;;  %v1572_v39 = vpop.f32.mrf.mxu0 }
 0x1d1   : > { %3511 = vst [vmem:[%s4778_s27 + $0x17c] sm:$0xf] %v4037_v33  ;;  %v2714_v38 = vadd.f32 %v4768_v41, %v1893_v37  ;;  %v4036_v40 = vpack.c.bf16 %v2710_v36, %v2709_v35  ;;  %v2712_v47 = vadd.f32 %v4771_v44, %v1572_v39 }
 0x1d2   : > { %v1895_v42 = vpop.f32.mrf.mxu1  ;;  %v1574_v46 = vpop.f32.mrf.mxu0 }
 0x1d3   : > { %v4039_v43 = vpack.c.bf16 %v2714_v38, %v2714_v38  ;;  %3510 = vst [vmem:[%s4778_s27 + $0x174] sm:$0xff] %v4036_v40  ;;  %v2713_v48 = vadd.f32 %v4773_v45, %v1574_v46 }
 0x1d4   : > { %v1896_v49 = vpop.f32.mrf.mxu1  ;;  %v1576_v51 = vpop.f32.mrf.mxu0 }
 0x1d5   : > { %3513 = vst [vmem:[%s4778_s27 + $0x188] sm:$0xf] %v4039_v43  ;;  %v2717_v50 = vadd.f32 %v4768_v41, %v1896_v49  ;;  %v4038_v52 = vpack.c.bf16 %v2713_v48, %v2712_v47  ;;  %v2715_v56 = vadd.f32 %v4771_v44, %v1576_v51 }
 0x1d6   : > { %v1898_v53 = vpop.f32.mrf.mxu1  ;;  %v1578_v55 = vpop.f32.mrf.mxu0 }
 0x1d7   : > { %v4041_v54 = vpack.c.bf16 %v2717_v50, %v2717_v50  ;;  %3512 = vst [vmem:[%s4778_s27 + $0x180] sm:$0xff] %v4038_v52  ;;  %v2716_v57 = vadd.f32 %v4773_v45, %v1578_v55 }
 0x1d8   : > { %v1901_v58 = vpop.f32.mrf.mxu1  ;;  %v1582_v60 = vpop.f32.mrf.mxu0 }
 0x1d9   : > { %3515 = vst [vmem:[%s4778_s27 + $0x194] sm:$0xf] %v4041_v54  ;;  %v2720_v59 = vadd.f32 %v4768_v41, %v1901_v58  ;;  %v4040_v61 = vpack.c.bf16 %v2716_v57, %v2715_v56  ;;  %v2718_v1 = vadd.f32 %v4771_v44, %v1582_v60 }
 0x1da   : > { %v1903_v62 = vpop.f32.mrf.mxu1  ;;  %v1584_v0 = vpop.f32.mrf.mxu0 }
 0x1db   : > { %v4043_v63 = vpack.c.bf16 %v2720_v59, %v2720_v59  ;;  %3514 = vst [vmem:[%s4778_s27 + $0x18c] sm:$0xff] %v4040_v61  ;;  %v2719_v2 = vadd.f32 %v4773_v45, %v1584_v0 }
 0x1dc   : > { %v1904_v3 = vpop.f32.mrf.mxu1  ;;  %v1586_v5 = vpop.f32.mrf.mxu0 }
 0x1dd   : > { %3517 = vst [vmem:[%s4778_s27 + $0x1a0] sm:$0xf] %v4043_v63  ;;  %v2723_v4 = vadd.f32 %v4768_v41, %v1904_v3  ;;  %v4042_v6 = vpack.c.bf16 %v2719_v2, %v2718_v1  ;;  %v2721_v10 = vadd.f32 %v4771_v44, %v1586_v5 }
 0x1de   : > { %v1906_v7 = vpop.f32.mrf.mxu1  ;;  %v1588_v9 = vpop.f32.mrf.mxu0 }
 0x1df   : > { %v4045_v8 = vpack.c.bf16 %v2723_v4, %v2723_v4  ;;  %3516 = vst [vmem:[%s4778_s27 + $0x198] sm:$0xff] %v4042_v6  ;;  %v2722_v11 = vadd.f32 %v4773_v45, %v1588_v9 }
 0x1e0   : > { %v1909_v12 = vpop.f32.mrf.mxu1  ;;  %v1592_v14 = vpop.f32.mrf.mxu0 }
 0x1e1   : > { %3519 = vst [vmem:[%s4778_s27 + $0x1ac] sm:$0xf] %v4045_v8  ;;  %v2726_v13 = vadd.f32 %v4768_v41, %v1909_v12  ;;  %v4044_v15 = vpack.c.bf16 %v2722_v11, %v2721_v10  ;;  %v2724_v19 = vadd.f32 %v4771_v44, %v1592_v14 }
 0x1e2   : > { %v1911_v16 = vpop.f32.mrf.mxu1  ;;  %v1594_v18 = vpop.f32.mrf.mxu0 }
 0x1e3   : > { %v4047_v17 = vpack.c.bf16 %v2726_v13, %v2726_v13  ;;  %3518 = vst [vmem:[%s4778_s27 + $0x1a4] sm:$0xff] %v4044_v15  ;;  %v2725_v20 = vadd.f32 %v4773_v45, %v1594_v18 }
 0x1e4   : > { %v1912_v21 = vpop.f32.mrf.mxu1  ;;  %v1596_v23 = vpop.f32.mrf.mxu0 }
 0x1e5   : > { %3521 = vst [vmem:[%s4778_s27 + $0x1b8] sm:$0xf] %v4047_v17  ;;  %v2729_v22 = vadd.f32 %v4768_v41, %v1912_v21  ;;  %v4046_v24 = vpack.c.bf16 %v2725_v20, %v2724_v19  ;;  %v2727_v28 = vadd.f32 %v4771_v44, %v1596_v23 }
 0x1e6   : > { %v1914_v25 = vpop.f32.mrf.mxu1  ;;  %v1598_v27 = vpop.f32.mrf.mxu0 }
 0x1e7   : > { %v4049_v26 = vpack.c.bf16 %v2729_v22, %v2729_v22  ;;  %3520 = vst [vmem:[%s4778_s27 + $0x1b0] sm:$0xff] %v4046_v24  ;;  %v2728_v29 = vadd.f32 %v4773_v45, %v1598_v27 }
 0x1e8   : > { %v1917_v30 = vpop.f32.mrf.mxu1  ;;  %v1602_v32 = vpop.f32.mrf.mxu0 }
 0x1e9   : > { %3523 = vst [vmem:[%s4778_s27 + $0x1c4] sm:$0xf] %v4049_v26  ;;  %v2732_v31 = vadd.f32 %v4768_v41, %v1917_v30  ;;  %v4048_v33 = vpack.c.bf16 %v2728_v29, %v2727_v28  ;;  %v2730_v37 = vadd.f32 %v4771_v44, %v1602_v32 }
 0x1ea   : > { %v1919_v34 = vpop.f32.mrf.mxu1  ;;  %v1604_v36 = vpop.f32.mrf.mxu0 }
 0x1eb   : > { %v4051_v35 = vpack.c.bf16 %v2732_v31, %v2732_v31  ;;  %3522 = vst [vmem:[%s4778_s27 + $0x1bc] sm:$0xff] %v4048_v33  ;;  %v2731_v38 = vadd.f32 %v4773_v45, %v1604_v36 }
 0x1ec   : > { %v1920_v39 = vpop.f32.mrf.mxu1  ;;  %v1606_v42 = vpop.f32.mrf.mxu0 }
 0x1ed   : > { %3525 = vst [vmem:[%s4778_s27 + $0x1d0] sm:$0xf] %v4051_v35  ;;  %v2735_v40 = vadd.f32 %v4768_v41, %v1920_v39  ;;  %v4050_v43 = vpack.c.bf16 %v2731_v38, %v2730_v37  ;;  %v2733_v49 = vadd.f32 %v4771_v44, %v1606_v42 }
 0x1ee   : > { %v1922_v46 = vpop.f32.mrf.mxu1  ;;  %v1608_v48 = vpop.f32.mrf.mxu0 }
 0x1ef   : > { %v4053_v47 = vpack.c.bf16 %v2735_v40, %v2735_v40  ;;  %3524 = vst [vmem:[%s4778_s27 + $0x1c8] sm:$0xff] %v4050_v43  ;;  %v2734_v50 = vadd.f32 %v4773_v45, %v1608_v48 }
 0x1f0   : > { %v1925_v51 = vpop.f32.mrf.mxu1  ;;  %v1612_v53 = vpop.f32.mrf.mxu0 }
 0x1f1   : > { %3527 = vst [vmem:[%s4778_s27 + $0x1dc] sm:$0xf] %v4053_v47  ;;  %v2738_v52 = vadd.f32 %v4768_v41, %v1925_v51  ;;  %v4052_v54 = vpack.c.bf16 %v2734_v50, %v2733_v49  ;;  %v2736_v58 = vadd.f32 %v4771_v44, %v1612_v53 }
 0x1f2   : > { %v1927_v55 = vpop.f32.mrf.mxu1  ;;  %v1614_v57 = vpop.f32.mrf.mxu0 }
 0x1f3   : > { %v4055_v56 = vpack.c.bf16 %v2738_v52, %v2738_v52  ;;  %3526 = vst [vmem:[%s4778_s27 + $0x1d4] sm:$0xff] %v4052_v54  ;;  %v2737_v59 = vadd.f32 %v4773_v45, %v1614_v57 }
 0x1f4   : > { %v1928_v60 = vpop.f32.mrf.mxu1  ;;  %v1616_v62 = vpop.f32.mrf.mxu0 }
 0x1f5   : > { %3529 = vst [vmem:[%s4778_s27 + $0x1e8] sm:$0xf] %v4055_v56  ;;  %v2741_v61 = vadd.f32 %v4768_v41, %v1928_v60  ;;  %v4054_v63 = vpack.c.bf16 %v2737_v59, %v2736_v58  ;;  %v2739_v3 = vadd.f32 %v4771_v44, %v1616_v62 }
 0x1f6   : > { %v1930_v0 = vpop.f32.mrf.mxu1  ;;  %v1618_v2 = vpop.f32.mrf.mxu0 }
 0x1f7   : > { %v4057_v1 = vpack.c.bf16 %v2741_v61, %v2741_v61  ;;  %3528 = vst [vmem:[%s4778_s27 + $0x1e0] sm:$0xff] %v4054_v63  ;;  %v2740_v4 = vadd.f32 %v4773_v45, %v1618_v2 }
 0x1f8   : > { %v1933_v5 = vpop.f32.mrf.mxu1  ;;  %v1622_v7 = vpop.f32.mrf.mxu0 }
 0x1f9   : > { %3531 = vst [vmem:[%s4778_s27 + $0x1f4] sm:$0xf] %v4057_v1  ;;  %v2744_v6 = vadd.f32 %v4768_v41, %v1933_v5  ;;  %v4056_v8 = vpack.c.bf16 %v2740_v4, %v2739_v3  ;;  %v2742_v12 = vadd.f32 %v4771_v44, %v1622_v7 }
 0x1fa   : > { %v1935_v9 = vpop.f32.mrf.mxu1  ;;  %v1624_v11 = vpop.f32.mrf.mxu0 }
 0x1fb   : > { %v4059_v10 = vpack.c.bf16 %v2744_v6, %v2744_v6  ;;  %3530 = vst [vmem:[%s4778_s27 + $0x1ec] sm:$0xff] %v4056_v8  ;;  %v2743_v13 = vadd.f32 %v4773_v45, %v1624_v11 }
 0x1fc   : > { %v1936_v14 = vpop.f32.mrf.mxu1  ;;  %v1626_v16 = vpop.f32.mrf.mxu0 }
 0x1fd   : > { %3533 = vst [vmem:[%s4778_s27 + $0x200] sm:$0xf] %v4059_v10  ;;  %v2747_v15 = vadd.f32 %v4768_v41, %v1936_v14  ;;  %v4058_v17 = vpack.c.bf16 %v2743_v13, %v2742_v12  ;;  %v2745_v21 = vadd.f32 %v4771_v44, %v1626_v16 }
 0x1fe   : > { %v1938_v18 = vpop.f32.mrf.mxu1  ;;  %v1628_v20 = vpop.f32.mrf.mxu0 }
 0x1ff   : > { %v4061_v19 = vpack.c.bf16 %v2747_v15, %v2747_v15  ;;  %3532 = vst [vmem:[%s4778_s27 + $0x1f8] sm:$0xff] %v4058_v17  ;;  %v2746_v22 = vadd.f32 %v4773_v45, %v1628_v20 }
 0x200   : > { %v1941_v23 = vpop.f32.mrf.mxu1  ;;  %v1632_v25 = vpop.f32.mrf.mxu0 }
 0x201   : > { %3535 = vst [vmem:[%s4778_s27 + $0x20c] sm:$0xf] %v4061_v19  ;;  %v2750_v24 = vadd.f32 %v4768_v41, %v1941_v23  ;;  %v4060_v26 = vpack.c.bf16 %v2746_v22, %v2745_v21  ;;  %v2748_v30 = vadd.f32 %v4771_v44, %v1632_v25 }
 0x202   : > { %v1943_v27 = vpop.f32.mrf.mxu1  ;;  %v1634_v29 = vpop.f32.mrf.mxu0 }
 0x203   : > { %v4063_v28 = vpack.c.bf16 %v2750_v24, %v2750_v24  ;;  %3534 = vst [vmem:[%s4778_s27 + $0x204] sm:$0xff] %v4060_v26  ;;  %v2749_v31 = vadd.f32 %v4773_v45, %v1634_v29 }
 0x204   : > { %v1944_v32 = vpop.f32.mrf.mxu1  ;;  %v1636_v34 = vpop.f32.mrf.mxu0 }
 0x205   : > { %3537 = vst [vmem:[%s4778_s27 + $0x218] sm:$0xf] %v4063_v28  ;;  %v2753_v33 = vadd.f32 %v4768_v41, %v1944_v32  ;;  %v4062_v35 = vpack.c.bf16 %v2749_v31, %v2748_v30  ;;  %v2751_v39 = vadd.f32 %v4771_v44, %v1636_v34 }
 0x206   : > { %v1946_v36 = vpop.f32.mrf.mxu1  ;;  %v1638_v38 = vpop.f32.mrf.mxu0 }
 0x207   : > { %v4065_v37 = vpack.c.bf16 %v2753_v33, %v2753_v33  ;;  %3536 = vst [vmem:[%s4778_s27 + $0x210] sm:$0xff] %v4062_v35  ;;  %v2752_v40 = vadd.f32 %v4773_v45, %v1638_v38 }
 0x208   : > { %v1949_v42 = vpop.f32.mrf.mxu1  ;;  %v1642_v46 = vpop.f32.mrf.mxu0 }
 0x209   : > { %3539 = vst [vmem:[%s4778_s27 + $0x224] sm:$0xf] %v4065_v37  ;;  %v2756_v43 = vadd.f32 %v4768_v41, %v1949_v42  ;;  %v4064_v47 = vpack.c.bf16 %v2752_v40, %v2751_v39  ;;  %v2754_v51 = vadd.f32 %v4771_v44, %v1642_v46 }
 0x20a   : > { %v1951_v48 = vpop.f32.mrf.mxu1  ;;  %v1644_v50 = vpop.f32.mrf.mxu0 }
 0x20b   : > { %v4067_v49 = vpack.c.bf16 %v2756_v43, %v2756_v43  ;;  %3538 = vst [vmem:[%s4778_s27 + $0x21c] sm:$0xff] %v4064_v47  ;;  %v2755_v52 = vadd.f32 %v4773_v45, %v1644_v50 }
 0x20c   : > { %v1952_v53 = vpop.f32.mrf.mxu1  ;;  %v1646_v55 = vpop.f32.mrf.mxu0 }
 0x20d   : > { %3541 = vst [vmem:[%s4778_s27 + $0x230] sm:$0xf] %v4067_v49  ;;  %v2759_v54 = vadd.f32 %v4768_v41, %v1952_v53  ;;  %v4066_v56 = vpack.c.bf16 %v2755_v52, %v2754_v51  ;;  %v2757_v60 = vadd.f32 %v4771_v44, %v1646_v55 }
 0x20e   : > { %v1954_v57 = vpop.f32.mrf.mxu1  ;;  %v1648_v59 = vpop.f32.mrf.mxu0 }
 0x20f   : > { %v4069_v58 = vpack.c.bf16 %v2759_v54, %v2759_v54  ;;  %3540 = vst [vmem:[%s4778_s27 + $0x228] sm:$0xff] %v4066_v56  ;;  %v2758_v61 = vadd.f32 %v4773_v45, %v1648_v59 }
 0x210   : > { %v1957_v62 = vpop.f32.mrf.mxu1  ;;  %v1652_v0 = vpop.f32.mrf.mxu0 }
 0x211   : > { %3543 = vst [vmem:[%s4778_s27 + $0x23c] sm:$0xf] %v4069_v58  ;;  %v2762_v63 = vadd.f32 %v4768_v41, %v1957_v62  ;;  %v4068_v1 = vpack.c.bf16 %v2758_v61, %v2757_v60  ;;  %v2760_v5 = vadd.f32 %v4771_v44, %v1652_v0 }
 0x212   : > { %v1959_v2 = vpop.f32.mrf.mxu1  ;;  %v1654_v4 = vpop.f32.mrf.mxu0 }
 0x213   : > { %v4071_v3 = vpack.c.bf16 %v2762_v63, %v2762_v63  ;;  %3542 = vst [vmem:[%s4778_s27 + $0x234] sm:$0xff] %v4068_v1  ;;  %v2761_v6 = vadd.f32 %v4773_v45, %v1654_v4 }
 0x214   : > { %v1960_v7 = vpop.f32.mrf.mxu1  ;;  %v1656_v9 = vpop.f32.mrf.mxu0 }
 0x215   : > { %3545 = vst [vmem:[%s4778_s27 + $0x248] sm:$0xf] %v4071_v3  ;;  %v2765_v8 = vadd.f32 %v4768_v41, %v1960_v7  ;;  %v4070_v10 = vpack.c.bf16 %v2761_v6, %v2760_v5  ;;  %v2763_v14 = vadd.f32 %v4771_v44, %v1656_v9 }
 0x216   : > { %v1962_v11 = vpop.f32.mrf.mxu1  ;;  %v1658_v13 = vpop.f32.mrf.mxu0 }
 0x217   : > { %v4073_v12 = vpack.c.bf16 %v2765_v8, %v2765_v8  ;;  %3544 = vst [vmem:[%s4778_s27 + $0x240] sm:$0xff] %v4070_v10  ;;  %v2764_v15 = vadd.f32 %v4773_v45, %v1658_v13 }
 0x218   : > { %v1965_v16 = vpop.f32.mrf.mxu1  ;;  %v1662_v18 = vpop.f32.mrf.mxu0 }
 0x219   : > { %3547 = vst [vmem:[%s4778_s27 + $0x254] sm:$0xf] %v4073_v12  ;;  %v2768_v17 = vadd.f32 %v4768_v41, %v1965_v16  ;;  %v4072_v19 = vpack.c.bf16 %v2764_v15, %v2763_v14  ;;  %v2766_v23 = vadd.f32 %v4771_v44, %v1662_v18 }
 0x21a   : > { %v1967_v20 = vpop.f32.mrf.mxu1  ;;  %v1664_v22 = vpop.f32.mrf.mxu0 }
 0x21b   : > { %v4075_v21 = vpack.c.bf16 %v2768_v17, %v2768_v17  ;;  %3546 = vst [vmem:[%s4778_s27 + $0x24c] sm:$0xff] %v4072_v19  ;;  %v2767_v24 = vadd.f32 %v4773_v45, %v1664_v22 }
 0x21c   : > { %v1968_v25 = vpop.f32.mrf.mxu1  ;;  %v1666_v27 = vpop.f32.mrf.mxu0 }
 0x21d   : > { %3549 = vst [vmem:[%s4778_s27 + $0x260] sm:$0xf] %v4075_v21  ;;  %v2771_v26 = vadd.f32 %v4768_v41, %v1968_v25  ;;  %v4074_v28 = vpack.c.bf16 %v2767_v24, %v2766_v23  ;;  %v2769_v32 = vadd.f32 %v4771_v44, %v1666_v27 }
 0x21e   : > { %v1970_v29 = vpop.f32.mrf.mxu1  ;;  %v1668_v31 = vpop.f32.mrf.mxu0 }
 0x21f   : > { %v4077_v30 = vpack.c.bf16 %v2771_v26, %v2771_v26  ;;  %3548 = vst [vmem:[%s4778_s27 + $0x258] sm:$0xff] %v4074_v28  ;;  %v2770_v33 = vadd.f32 %v4773_v45, %v1668_v31 }
 0x220   : > { %v1973_v34 = vpop.f32.mrf.mxu1  ;;  %v1672_v36 = vpop.f32.mrf.mxu0 }
 0x221   : > { %3551 = vst [vmem:[%s4778_s27 + $0x26c] sm:$0xf] %v4077_v30  ;;  %v2774_v35 = vadd.f32 %v4768_v41, %v1973_v34  ;;  %v4076_v37 = vpack.c.bf16 %v2770_v33, %v2769_v32  ;;  %v2772_v42 = vadd.f32 %v4771_v44, %v1672_v36 }
 0x222   : > { %v1975_v38 = vpop.f32.mrf.mxu1  ;;  %v1674_v40 = vpop.f32.mrf.mxu0 }
 0x223   : > { %v4079_v39 = vpack.c.bf16 %v2774_v35, %v2774_v35  ;;  %3550 = vst [vmem:[%s4778_s27 + $0x264] sm:$0xff] %v4076_v37  ;;  %v2773_v43 = vadd.f32 %v4773_v45, %v1674_v40 }
 0x224   : > { %v1976_v46 = vpop.f32.mrf.mxu1  ;;  %v1676_v48 = vpop.f32.mrf.mxu0 }
 0x225   : > { %3553 = vst [vmem:[%s4778_s27 + $0x278] sm:$0xf] %v4079_v39  ;;  %v2777_v47 = vadd.f32 %v4768_v41, %v1976_v46  ;;  %v4078_v49 = vpack.c.bf16 %v2773_v43, %v2772_v42  ;;  %v2775_v53 = vadd.f32 %v4771_v44, %v1676_v48 }
 0x226   : > { %v1978_v50 = vpop.f32.mrf.mxu1  ;;  %v1678_v52 = vpop.f32.mrf.mxu0 }
 0x227   : > { %v4081_v51 = vpack.c.bf16 %v2777_v47, %v2777_v47  ;;  %3552 = vst [vmem:[%s4778_s27 + $0x270] sm:$0xff] %v4078_v49  ;;  %v2776_v54 = vadd.f32 %v4773_v45, %v1678_v52 }
 0x228   : > { %v1981_v55 = vpop.f32.mrf.mxu1  ;;  %v1682_v57 = vpop.f32.mrf.mxu0 }
 0x229   : > { %3555 = vst [vmem:[%s4778_s27 + $0x284] sm:$0xf] %v4081_v51  ;;  %v2780_v56 = vadd.f32 %v4768_v41, %v1981_v55  ;;  %v4080_v58 = vpack.c.bf16 %v2776_v54, %v2775_v53  ;;  %v2778_v62 = vadd.f32 %v4771_v44, %v1682_v57 }
 0x22a   : > { %v1983_v59 = vpop.f32.mrf.mxu1  ;;  %v1684_v61 = vpop.f32.mrf.mxu0 }
 0x22b   : > { %v4083_v60 = vpack.c.bf16 %v2780_v56, %v2780_v56  ;;  %3554 = vst [vmem:[%s4778_s27 + $0x27c] sm:$0xff] %v4080_v58  ;;  %v2779_v63 = vadd.f32 %v4773_v45, %v1684_v61 }
 0x22c   : > { %v1984_v0 = vpop.f32.mrf.mxu1  ;;  %v1686_v2 = vpop.f32.mrf.mxu0 }
 0x22d   : > { %3557 = vst [vmem:[%s4778_s27 + $0x290] sm:$0xf] %v4083_v60  ;;  %v2783_v1 = vadd.f32 %v4768_v41, %v1984_v0  ;;  %v4082_v3 = vpack.c.bf16 %v2779_v63, %v2778_v62  ;;  %v2781_v7 = vadd.f32 %v4771_v44, %v1686_v2 }
 0x22e   : > { %v1986_v4 = vpop.f32.mrf.mxu1  ;;  %v1688_v6 = vpop.f32.mrf.mxu0 }
 0x22f   : > { %v4085_v5 = vpack.c.bf16 %v2783_v1, %v2783_v1  ;;  %3556 = vst [vmem:[%s4778_s27 + $0x288] sm:$0xff] %v4082_v3  ;;  %v2782_v8 = vadd.f32 %v4773_v45, %v1688_v6 }
 0x230   : > { %v1989_v9 = vpop.f32.mrf.mxu1  ;;  %v1692_v11 = vpop.f32.mrf.mxu0 }
 0x231   : > { %3559 = vst [vmem:[%s4778_s27 + $0x29c] sm:$0xf] %v4085_v5  ;;  %v2786_v10 = vadd.f32 %v4768_v41, %v1989_v9  ;;  %v4084_v12 = vpack.c.bf16 %v2782_v8, %v2781_v7  ;;  %v2784_v16 = vadd.f32 %v4771_v44, %v1692_v11 }
 0x232   : > { %v1991_v13 = vpop.f32.mrf.mxu1  ;;  %v1694_v15 = vpop.f32.mrf.mxu0 }
 0x233   : > { %v4087_v14 = vpack.c.bf16 %v2786_v10, %v2786_v10  ;;  %3558 = vst [vmem:[%s4778_s27 + $0x294] sm:$0xff] %v4084_v12  ;;  %v2785_v17 = vadd.f32 %v4773_v45, %v1694_v15 }
 0x234   : > { %v1992_v18 = vpop.f32.mrf.mxu1  ;;  %v1696_v20 = vpop.f32.mrf.mxu0 }
 0x235   : > { %3561 = vst [vmem:[%s4778_s27 + $0x2a8] sm:$0xf] %v4087_v14  ;;  %v2789_v19 = vadd.f32 %v4768_v41, %v1992_v18  ;;  %v4086_v21 = vpack.c.bf16 %v2785_v17, %v2784_v16  ;;  %v2787_v25 = vadd.f32 %v4771_v44, %v1696_v20 }
 0x236   : > { %v1994_v22 = vpop.f32.mrf.mxu1  ;;  %v1698_v24 = vpop.f32.mrf.mxu0 }
 0x237   : > { %v4089_v23 = vpack.c.bf16 %v2789_v19, %v2789_v19  ;;  %3560 = vst [vmem:[%s4778_s27 + $0x2a0] sm:$0xff] %v4086_v21  ;;  %v2788_v26 = vadd.f32 %v4773_v45, %v1698_v24 }
 0x238   : > { %v1997_v27 = vpop.f32.mrf.mxu1  ;;  %v1702_v29 = vpop.f32.mrf.mxu0 }
 0x239   : > { %3563 = vst [vmem:[%s4778_s27 + $0x2b4] sm:$0xf] %v4089_v23  ;;  %v2792_v28 = vadd.f32 %v4768_v41, %v1997_v27  ;;  %v4088_v30 = vpack.c.bf16 %v2788_v26, %v2787_v25  ;;  %v2790_v34 = vadd.f32 %v4771_v44, %v1702_v29 }
 0x23a   : > { %v1999_v31 = vpop.f32.mrf.mxu1  ;;  %v1704_v33 = vpop.f32.mrf.mxu0 }
 0x23b   : > { %v4091_v32 = vpack.c.bf16 %v2792_v28, %v2792_v28  ;;  %3562 = vst [vmem:[%s4778_s27 + $0x2ac] sm:$0xff] %v4088_v30  ;;  %v2791_v35 = vadd.f32 %v4773_v45, %v1704_v33 }
 0x23c   : > { %v2000_v36 = vpop.f32.mrf.mxu1  ;;  %v1706_v38 = vpop.f32.mrf.mxu0 }
 0x23d   : > { %3565 = vst [vmem:[%s4778_s27 + $0x2c0] sm:$0xf] %v4091_v32  ;;  %v2795_v37 = vadd.f32 %v4768_v41, %v2000_v36  ;;  %v4090_v39 = vpack.c.bf16 %v2791_v35, %v2790_v34  ;;  %v2793_v46 = vadd.f32 %v4771_v44, %v1706_v38 }
 0x23e   : > { %v2002_v40 = vpop.f32.mrf.mxu1  ;;  %v1708_v43 = vpop.f32.mrf.mxu0 }
 0x23f   : > { %v4093_v42 = vpack.c.bf16 %v2795_v37, %v2795_v37  ;;  %3564 = vst [vmem:[%s4778_s27 + $0x2b8] sm:$0xff] %v4090_v39  ;;  %v2794_v47 = vadd.f32 %v4773_v45, %v1708_v43 }
 0x240   : > { %v2005_v48 = vpop.f32.mrf.mxu1  ;;  %v1712_v50 = vpop.f32.mrf.mxu0 }
 0x241   : > { %3567 = vst [vmem:[%s4778_s27 + $0x2cc] sm:$0xf] %v4093_v42  ;;  %v2798_v49 = vadd.f32 %v4768_v41, %v2005_v48  ;;  %v4092_v51 = vpack.c.bf16 %v2794_v47, %v2793_v46  ;;  %v2796_v55 = vadd.f32 %v4771_v44, %v1712_v50 }
 0x242   : > { %v2007_v52 = vpop.f32.mrf.mxu1  ;;  %v1714_v54 = vpop.f32.mrf.mxu0 }
 0x243   : > { %v4095_v53 = vpack.c.bf16 %v2798_v49, %v2798_v49  ;;  %3566 = vst [vmem:[%s4778_s27 + $0x2c4] sm:$0xff] %v4092_v51  ;;  %v2797_v56 = vadd.f32 %v4773_v45, %v1714_v54 }
 0x244   : > { %v2008_v57 = vpop.f32.mrf.mxu1  ;;  %v1716_v59 = vpop.f32.mrf.mxu0 }
 0x245   : > { %3569 = vst [vmem:[%s4778_s27 + $0x2d8] sm:$0xf] %v4095_v53  ;;  %v2801_v58 = vadd.f32 %v4768_v41, %v2008_v57  ;;  %v4094_v60 = vpack.c.bf16 %v2797_v56, %v2796_v55  ;;  %v2799_v0 = vadd.f32 %v4771_v44, %v1716_v59 }
 0x246   : > { %v2010_v61 = vpop.f32.mrf.mxu1  ;;  %v1718_v63 = vpop.f32.mrf.mxu0 }
 0x247   : > { %v4097_v62 = vpack.c.bf16 %v2801_v58, %v2801_v58  ;;  %3568 = vst [vmem:[%s4778_s27 + $0x2d0] sm:$0xff] %v4094_v60  ;;  %v2800_v1 = vadd.f32 %v4773_v45, %v1718_v63 }
 0x248   : > { %v2013_v2 = vpop.f32.mrf.mxu1  ;;  %v1722_v4 = vpop.f32.mrf.mxu0 }
 0x249   : > { %3571 = vst [vmem:[%s4778_s27 + $0x2e4] sm:$0xf] %v4097_v62  ;;  %v2804_v3 = vadd.f32 %v4768_v41, %v2013_v2  ;;  %v4096_v5 = vpack.c.bf16 %v2800_v1, %v2799_v0  ;;  %v2802_v9 = vadd.f32 %v4771_v44, %v1722_v4 }
 0x24a   : > { %v2015_v6 = vpop.f32.mrf.mxu1  ;;  %v1724_v8 = vpop.f32.mrf.mxu0 }
 0x24b   : > { %v4099_v7 = vpack.c.bf16 %v2804_v3, %v2804_v3  ;;  %3570 = vst [vmem:[%s4778_s27 + $0x2dc] sm:$0xff] %v4096_v5  ;;  %v2803_v10 = vadd.f32 %v4773_v45, %v1724_v8 }
 0x24c   : > { %v2016_v11 = vpop.f32.mrf.mxu1  ;;  %v1726_v13 = vpop.f32.mrf.mxu0 }
 0x24d   : > { %3573 = vst [vmem:[%s4778_s27 + $0x2f0] sm:$0xf] %v4099_v7  ;;  %v2807_v12 = vadd.f32 %v4768_v41, %v2016_v11  ;;  %v4098_v14 = vpack.c.bf16 %v2803_v10, %v2802_v9  ;;  %v2805_v18 = vadd.f32 %v4771_v44, %v1726_v13 }
 0x24e   : > { %v2018_v15 = vpop.f32.mrf.mxu1  ;;  %v1728_v17 = vpop.f32.mrf.mxu0 }
 0x24f   : > { %v4101_v16 = vpack.c.bf16 %v2807_v12, %v2807_v12  ;;  %3572 = vst [vmem:[%s4778_s27 + $0x2e8] sm:$0xff] %v4098_v14  ;;  %v2806_v19 = vadd.f32 %v4773_v45, %v1728_v17 }
 0x251   : > { %3575 = vst [vmem:[%s4778_s27 + $0x2fc] sm:$0xf] %v4101_v16  ;;  %v4100_v41 = vpack.c.bf16 %v2806_v19, %v2805_v18 }
 0x253   : > { %3574 = vst [vmem:[%s4778_s27 + $0x2f4] sm:$0xff] %v4100_v41 }
 0x254   : > { %4450 = shalt.err (!%p4447_p6)
}
 0x255   : > { %s4451_s29 = scalar_lea.hbm %s5100_s15, 12288  ;;  %s4455_s5 = scalar_lea.hbm %s5155_s3, 24576 }
 0x256   : > { %p4452_p8 = scmp.ne.s32.totalorder %s5100_s15, %s4451_s29  ;;  %p4456_p11 = scmp.lt.s32.totalorder %s5100_s15, %s5155_s3 }
 0x257   : > { %p4457_p12 = scmp.lt.s32.totalorder %s4455_s5, %s4451_s29 }
 0x258   : > { %p4453_p5 = pnand %p4452_p8, %p5168_p10 }
 0x259   : > { %p4458_p13 = por %p4457_p12, %p4456_p11 }
 0x25a   : > { %p4454_p9 = pneg %p4453_p5 }
 0x25c   : > { %p4459_p7 = pnand %p4458_p13, %p4454_p9 }
 0x25e   : > { %4462 = shalt.err (!%p4459_p7)
}
 0x25f   : > { %s4533_s27 = smov 192   ;;  %s4534_s10 = smov 384  }
 0x260   : > { %s4535_s6 = smov 12  }
 0x261   : > { %4116 = dma.vmem_to_hbm [thread:$0]  (%p5168_p10), %s5103_s19, 12288, %s5100_s15, %s3577_s8, %s4533_s27, %s4534_s10, %s4535_s6  }
 0x262 PF: > { %s3608_s4 = sand.u32 1, %s4501_s12   ;;  %p5169_p2 = scmp.ne.s32.totalorder %s5162_s26, 0 }
 0x263   : > { %p5170_p1 = scmp.ge.s32.totalorder %s4521_s17, 2  ;;  %s3609_s9 = scalar_lea.sflag [#allocation5], %s3608_s4 }
 0x265   : > { %p4130_p0 = pnand %p5170_p1, %p5169_p2 }
 0x267   : > { %p4131_p3 = pneg %p4130_p0 }
 0x269   : > { %4496 = dma.done.wait (%p4131_p3), %s3609_s9, 12288  }
 0x26a   : > { %4498 = vsyncadd (%p4131_p3), %s3609_s9, 4294955008  ;;  %s20_s17 = sadd.s32 1, %s4521_s17   ;;  %s5171_s12 = smov %s4505_s13 }
 0x26b   : > { %p17_p4 = scmp.ge.s32.totalorder %s20_s17, 4   ;;  %s5172_s13 = smov %s4509_s14 }
 0x26c   : > { %s5173_s14 = smov %s4604_s24  ;;  %s5174_s15 = smov %s4517_s16 }
 0x26d   : > { %s5175_s16 = smov %s5177_s18  ;;  %19 = sbr.rel (!%p17_p4) target bundleno = 7 (0x7), region = 102 }
 0x272   :  { %3614 = vsyncpa [#allocation4], 1 }
 0x273   :  { %3616 = vsyncpa [#allocation4 + $0x1], 1 }
 0x274   :  { %3617 = vsyncpa [#allocation7], 1 }
 0x275   :  { %3619 = vsyncpa [#allocation7 + $0x1], 1 }
 0x276   :  { %3620 = vsyncpa [#allocation5], 1 }
 0x277   :  { %3622 = vsyncpa [#allocation5 + $0x1], 1 }

</bundles_post_ra>
